<compile_context>
chip_gen: v6e
topology: v6e:2x2x1
jax: 0.10.0
libtpu: 0.0.40
codegen_flags: <defaults>
</compile_context>

<pallas_src>
import functools
import math

import jax
import jax.numpy as jnp
from jax.experimental import pallas as pl
from jax.experimental.pallas import tpu as pltpu

# MXU input dtype.  bf16 halves weight DMA and multiplies MXU rate on
# v5e/v6e/v7x; accumulation and the softmax/layernorm epilogue stay f32.
MATMUL_DTYPE = jnp.bfloat16
# EUP approximate reciprocal for the softmax denominator (perf knob; set False
# for an exact divide).
APPROX_RECIPROCAL = True
LN_EPS = 1e-5

# Row indices of the packed per-layer (9, D) bias / LayerNorm slab.
_BQ, _BK, _BV, _BO, _B2, _N1W, _N1B, _N2W, _N2B = range(9)


def _layer_norm(x, w, b, eps=LN_EPS):
    mu = jnp.mean(x, axis=-1, keepdims=True)
    var = jnp.mean((x - mu) ** 2, axis=-1, keepdims=True)
    return (x - mu) * jax.lax.rsqrt(var + eps) * w + b


def _fused_layers_kernel(num_layers,
                         x_ref, hp_ref,
                         wq_ref, wk_ref, wv_ref, wo_ref, w1_ref, w2_ref,
                         vecd_ref, vecff_ref,
                         o_ref, acc_ref, ctx_ref):
    layer = pl.program_id(1)
    B, TS, D = x_ref.shape
    rows = B * TS
    cdt = wq_ref.dtype                       # MXU input dtype

    # First layer of this S block: load the activation into the f32 VMEM
    # accumulator.  It stays resident for the whole layer loop.
    @pl.when(layer == 0)
    def _():
        acc_ref[...] = x_ref[...].reshape(rows, D).astype(jnp.float32)

    x = acc_ref[...]                          # (rows, D) f32
    xc = x.astype(cdt)

    def vd(i):
        return vecd_ref[i:i + 1, :]           # (1, D) f32 bias / LN row

    # --- QKV projections (1/sqrt(hd) already folded into wq/bq) ---
    q = jnp.dot(xc, wq_ref[...], preferred_element_type=jnp.float32) + vd(_BQ)
    k = jnp.dot(xc, wk_ref[...], preferred_element_type=jnp.float32) + vd(_BK)
    v = jnp.dot(xc, wv_ref[...], preferred_element_type=jnp.float32) + vd(_BV)

    hp = hp_ref[...]                          # (D, D) block-diag head projector

    def brow(a, b):
        # Static, sublane-aligned row block of batch index b.
        return a[b * TS:(b + 1) * TS, :]

    # Attention over the leading B axis (batch_first=False semantics of the
    # reference), independently for every position t and head h.  (q*k)@hp
    # yields per-head score sums replicated across each head's lanes, so every
    # intermediate stays a lane-dense (TS, D) array.  B is tiny, so the
    # softmax over B is a short unrolled online (running max/sum) reduction.
    for b in range(B):
        qb = brow(q, b)
        m = denom = num = None
        for c in range(B):
            s = jnp.dot((qb * brow(k, c)).astype(cdt), hp,
                        preferred_element_type=jnp.float32)      # (TS, D)
            if c == 0:
                m = s
                denom = jnp.ones_like(s)
                num = brow(v, 0)
            else:
                m_new = jnp.maximum(m, s)
                alpha = jnp.exp(m - m_new)
                p = jnp.exp(s - m_new)
                denom = alpha * denom + p
                num = alpha * num + p * brow(v, c)
                m = m_new
        if APPROX_RECIPROCAL:
            inv = pl.reciprocal(denom, approx=True)   # EUP slot, ~free
        else:
            inv = 1.0 / denom
        ctx_ref[b * TS:(b + 1) * TS, :] = (num * inv).astype(cdt)

    attn = jnp.dot(ctx_ref[...], wo_ref[...],
                   preferred_element_type=jnp.float32) + vd(_BO)
    # TODO(synk): nn.Dropout treated as identity (eval-mode semantics).
    x1 = _layer_norm(x + attn, vd(_N1W), vd(_N1B))

    # --- feed forward (Linear -> ReLU -> Linear) ---
    h1 = jnp.maximum(
        jnp.dot(x1.astype(cdt), w1_ref[...],
                preferred_element_type=jnp.float32) + vecff_ref[...], 0.0)
    ff = jnp.dot(h1.astype(cdt), w2_ref[...],
                 preferred_element_type=jnp.float32) + vd(_B2)
    x2 = _layer_norm(x1 + ff, vd(_N2W), vd(_N2B))

    acc_ref[...] = x2

    @pl.when(layer == num_layers - 1)
    def _():
        o_ref[...] = x2.reshape(B, TS, D).astype(o_ref.dtype)


def _choose_block_s(S, B, target_rows=512):
    # Aim for ~target_rows rows (B*TS) per matmul slab so the per-S-block
    # weight re-streaming stays MXU-bound (raise to ~1024 on v6e, keep ~256 on
    # v5e if VMEM-tight).  TS must divide S and be a multiple of 8 (sublane
    # granularity) unless it equals S; prefer >=2 S blocks for v7x megacore.
    target_ts = max(1, target_rows // max(B, 1))
    cands = [ts for ts in range(1, S + 1)
             if S % ts == 0 and (ts % 8 == 0 or ts == S) and ts <= target_ts]
    if not cands:
        small = [ts for ts in range(8, S, 8) if S % ts == 0]
        return min(small) if small else S
    multi = [ts for ts in cands if S // ts >= 2]
    return max(multi) if multi else max(cands)


def _vmem_budget_bytes():
    # Generation-aware scoped-VMEM budget: physical capacity minus headroom
    # (128 MiB on v5e/v6e -> ~112 MiB; 64 MiB on v7x -> ~48 MiB).
    try:
        cap = int(pltpu.get_tpu_info().vmem_capacity_bytes)
    except Exception:
        cap = 64 * 1024 * 1024
    return max(32 * 1024 * 1024, cap - 16 * 1024 * 1024)


def _vmem_estimate(B, TS, D, FF, itemsize, ff_buffers):
    rows = B * TS
    attn_w = 2 * 4 * D * D * itemsize            # wq/wk/wv/wo double-buffered
    ff_w = ff_buffers * 2 * D * FF * itemsize    # w1/w2 weight stream
    hp = 2 * D * D * itemsize                    # head projector
    io = 2 * 2 * rows * D * 4                    # x in + out blocks, 2 bufs
    scratch = rows * D * (4 + itemsize)          # acc (f32) + ctx (MXU dtype)
    h1 = rows * FF * 4                           # transient FF activation
    vecs = 2 * (9 * D + FF) * 4
    return attn_w + ff_w + hp + io + scratch + h1 + vecs


def fused_encoder_layers(x, p, *, block_s=None, target_rows=512):
    """x: (B, S, D) in the native layout; runs all encoder layers fused."""
    B, S, D = x.shape
    num_layers = p["wq"].shape[0]
    FF = p["w1"].shape[2]
    TS = block_s if block_s is not None else _choose_block_s(S, B, target_rows)
    assert S % TS == 0
    n_blocks = S // TS

    itm = jnp.dtype(p["wq"].dtype).itemsize
    budget = _vmem_budget_bytes()
    ff_buffers = 2
    if _vmem_estimate(B, TS, D, FF, itm, 2) > budget:
        # Large D/FF on small-VMEM parts (v7x): single-buffer the big FF
        # weights, keep the smaller attention weights double-buffered.
        ff_buffers = 1
    est = _vmem_estimate(B, TS, D, FF, itm, ff_buffers)
    vmem_limit = int(min(budget, max(32 * 1024 * 1024, int(1.5 * est))))

    def wspec(shape, buffers=None):
        # Stacked per-layer weight/bias: leading layer axis squeezed, indexed
        # by the layer grid axis (next layer's weights prefetched while the
        # current layer computes).
        kwargs = {}
        if buffers is not None and buffers != 2:
            kwargs["pipeline_mode"] = pl.Buffered(buffers)
        return pl.BlockSpec((None,) + shape,
                            lambda s, l, _n=len(shape): (l,) + (0,) * _n,
                            **kwargs)

    kernel = functools.partial(_fused_layers_kernel, num_layers)
    return pl.pallas_call(
        kernel,
        out_shape=jax.ShapeDtypeStruct((B, S, D), x.dtype),
        grid=(n_blocks, num_layers),
        in_specs=[
            pl.BlockSpec((B, TS, D), lambda s, l: (0, s, 0)),
            pl.BlockSpec((D, D), lambda s, l: (0, 0)),   # head projector (resident)
            wspec((D, D)), wspec((D, D)), wspec((D, D)), wspec((D, D)),
            wspec((D, FF), ff_buffers), wspec((FF, D), ff_buffers),
            wspec((9, D)), wspec((1, FF)),
        ],
        out_specs=pl.BlockSpec((B, TS, D), lambda s, l: (0, s, 0)),
        scratch_shapes=[pltpu.VMEM((B * TS, D), jnp.float32),
                        pltpu.VMEM((B * TS, D), p["wq"].dtype)],
        compiler_params=pltpu.CompilerParams(
            dimension_semantics=("parallel", "arbitrary"),
            vmem_limit_bytes=vmem_limit),
    )(x, p["head_proj"], p["wq"], p["wk"], p["wv"], p["wo"],
      p["w1"], p["w2"], p["vec_d"], p["vec_ff"])


def rope_positional_encoding(seq_length, d_model, base=10000.0):
    # theta[i] = base ** (-2 * (i // 2) / d_model); interleaved (cos, sin).
    i = jnp.arange(d_model)
    theta = base ** (-2.0 * (i // 2).astype(jnp.float32) / d_model)
    positions = jnp.arange(seq_length, dtype=jnp.float32)
    angles = positions[:, None] * theta[None, :]                      # (S, D)
    sin_cos = jnp.stack([jnp.cos(angles), jnp.sin(angles)], axis=-1)  # (S, D, 2)
    return sin_cos.reshape(seq_length, 2 * d_model)                   # (S, 2D)


@functools.partial(jax.jit, static_argnames=("block_s", "target_rows"))
def long_rope_forward(packed, input_ids, *, block_s=None, target_rows=512):
    B, S = input_ids.shape
    D = packed["embedding"].shape[1]
    emb = jnp.take(packed["embedding"], input_ids, axis=0)            # (B, S, D)
    # n_hat_base == 0 and lambda_factors is None in __init__, so both
    # non_uniform_interpolation branches are skipped (as in the reference);
    # pos_embeddings[:, :seq_length, :d_model] == first D interleaved columns.
    pe = rope_positional_encoding(S, D)[:, :D]                        # (S, D)
    x = emb + pe[None, :, :]                                          # (B, S, D)
    return fused_encoder_layers(x, packed, block_s=block_s,
                                target_rows=target_rows)


def init_params(key, d_model, num_layers, vocab_size, dim_feedforward=2048):
    keys = jax.random.split(key, 1 + num_layers)
    params = {
        "embedding": 0.02 * jax.random.normal(
            keys[0], (vocab_size, d_model), jnp.float32),
        "layers": [],
    }
    for l in range(num_layers):
        ks = jax.random.split(keys[1 + l], 8)
        params["layers"].append({
            "in_w": 0.02 * jax.random.normal(ks[0], (3 * d_model, d_model), jnp.float32),
            "in_b": 0.02 * jax.random.normal(ks[1], (3 * d_model,), jnp.float32),
            "out_w": 0.02 * jax.random.normal(ks[2], (d_model, d_model), jnp.float32),
            "out_b": 0.02 * jax.random.normal(ks[3], (d_model,), jnp.float32),
            "lin1_w": 0.02 * jax.random.normal(ks[4], (dim_feedforward, d_model), jnp.float32),
            "lin1_b": 0.02 * jax.random.normal(ks[5], (dim_feedforward,), jnp.float32),
            "lin2_w": 0.02 * jax.random.normal(ks[6], (d_model, dim_feedforward), jnp.float32),
            "lin2_b": 0.02 * jax.random.normal(ks[7], (d_model,), jnp.float32),
            "n1_w": jnp.ones((d_model,), jnp.float32),
            "n1_b": jnp.zeros((d_model,), jnp.float32),
            "n2_w": jnp.ones((d_model,), jnp.float32),
            "n2_b": jnp.zeros((d_model,), jnp.float32),
        })
    return params


def pack_params(params, n_heads, matmul_dtype=MATMUL_DTYPE):
    """Split in_proj into Wq/Wk/Wv, pre-transpose weights to (in, out), fold
    the 1/sqrt(head_dim) scale into Wq/bq, pack the small bias/LN vectors into
    two slabs, stack layers along a leading axis and cast matmul weights to
    the MXU dtype (biases / LN params stay f32)."""
    D = params["embedding"].shape[1]
    assert D % n_heads == 0
    hd = D // n_heads
    scale = 1.0 / math.sqrt(hd)

    def stack(fn):
        return jnp.stack([fn(l) for l in params["layers"]], axis=0)

    # Block-diagonal head projector, hoisted out of the kernel (DMA'd once).
    di = jnp.arange(D)[:, None] // hd
    dj = jnp.arange(D)[None, :] // hd
    head_proj = (di == dj).astype(matmul_dtype)

    vec_d = stack(lambda l: jnp.stack([
        scale * l["in_b"][0 * D:1 * D],          # bq (scaled)
        l["in_b"][1 * D:2 * D],                  # bk
        l["in_b"][2 * D:3 * D],                  # bv
        l["out_b"], l["lin2_b"],                 # bo, b2
        l["n1_w"], l["n1_b"], l["n2_w"], l["n2_b"]], axis=0))   # (L, 9, D)
    vec_ff = stack(lambda l: l["lin1_b"][None, :])              # (L, 1, FF)

    return {
        "embedding": params["embedding"],
        "head_proj": head_proj,
        "wq": stack(lambda l: (scale * l["in_w"][0 * D:1 * D, :]).T).astype(matmul_dtype),
        "wk": stack(lambda l: l["in_w"][1 * D:2 * D, :].T).astype(matmul_dtype),
        "wv": stack(lambda l: l["in_w"][2 * D:3 * D, :].T).astype(matmul_dtype),
        "wo": stack(lambda l: l["out_w"].T).astype(matmul_dtype),
        "w1": stack(lambda l: l["lin1_w"].T).astype(matmul_dtype),
        "w2": stack(lambda l: l["lin2_w"].T).astype(matmul_dtype),
        "vec_d": vec_d.astype(jnp.float32),
        "vec_ff": vec_ff.astype(jnp.float32),
    }


def reference_forward(params, input_ids, n_heads):
    """Pure-JAX f32 reference with the same forward-pass semantics."""
    emb = jnp.take(params["embedding"], input_ids, axis=0)
    B, S = input_ids.shape
    D = emb.shape[-1]
    hd = D // n_heads
    pe = rope_positional_encoding(S, D)[:, :D]
    x = emb + pe[None, :, :]
    for p in params["layers"]:
        qkv = jnp.einsum("bsd,ed->bse", x, p["in_w"]) + p["in_b"]
        q, k, v = qkv[..., :D], qkv[..., D:2 * D], qkv[..., 2 * D:]
        qh = q.reshape(B, S, n_heads, hd)
        kh = k.reshape(B, S, n_heads, hd)
        vh = v.reshape(B, S, n_heads, hd)
        scores = jnp.einsum("bshe,cshe->shbc", qh, kh) / math.sqrt(hd)
        probs = jax.nn.softmax(scores, axis=-1)
        ctx = jnp.einsum("shbc,cshe->bshe", probs, vh).reshape(B, S, D)
        attn = jnp.einsum("bsd,ed->bse", ctx, p["out_w"]) + p["out_b"]
        x1 = _layer_norm(x + attn, p["n1_w"], p["n1_b"])
        h = jax.nn.relu(jnp.einsum("bsd,fd->bsf", x1, p["lin1_w"]) + p["lin1_b"])
        ff = jnp.einsum("bsf,df->bsd", h, p["lin2_w"]) + p["lin2_b"]
        x = _layer_norm(x1 + ff, p["n2_w"], p["n2_b"])
    return x


if __name__ == "__main__":
    # Small demo shapes: D a multiple of 128 keeps every matmul operand and
    # the output store lane-dense (no masked vst / half-empty MXU passes).
    d_model, n_heads, num_layers, vocab_size = 128, 4, 2, 256
    B, S = 2, 16
    key = jax.random.PRNGKey(0)
    pkey, dkey = jax.random.split(key)
    params = init_params(pkey, d_model, num_layers, vocab_size)
    packed = pack_params(params, n_heads=n_heads)
    input_ids = jax.random.randint(dkey, (B, S), 0, vocab_size, dtype=jnp.int32)

    out = long_rope_forward(packed, input_ids)
    out = jax.block_until_ready(out)
    assert out.shape == (B, S, d_model)
    assert bool(jnp.all(jnp.isfinite(out)))

    # Loose tolerance: bf16 MXU inputs + approximate softmax reciprocal.
    ref = reference_forward(params, input_ids, n_heads)
    err = float(jnp.max(jnp.abs(out.astype(jnp.float32) - ref)))
    assert err < 0.1, f"max abs error vs reference = {err}"
    print("KERNEL_OK")
</pallas_src>

<mosaic_0001>
module attributes {stable_mosaic.version = 11 : i64} {
  func.func @_fused_layers_kernel(%arg0: i32, %arg1: i32, %arg2: memref<2x8x128xf32, #tpu.memory_space<vmem>>, %arg3: memref<128x128xbf16, #tpu.memory_space<vmem>>, %arg4: memref<1x128x128xbf16, #tpu.memory_space<vmem>>, %arg5: memref<1x128x128xbf16, #tpu.memory_space<vmem>>, %arg6: memref<1x128x128xbf16, #tpu.memory_space<vmem>>, %arg7: memref<1x128x128xbf16, #tpu.memory_space<vmem>>, %arg8: memref<1x128x2048xbf16, #tpu.memory_space<vmem>>, %arg9: memref<1x2048x128xbf16, #tpu.memory_space<vmem>>, %arg10: memref<1x9x128xf32, #tpu.memory_space<vmem>>, %arg11: memref<1x1x2048xf32, #tpu.memory_space<vmem>>, %arg12: memref<2x8x128xf32, #tpu.memory_space<vmem>>, %arg13: memref<16x128xf32, #tpu.memory_space<vmem>>, %arg14: memref<16x128xbf16, #tpu.memory_space<vmem>>) attributes {dimension_semantics = [#tpu.dimension_semantics<parallel>, #tpu.dimension_semantics<arbitrary>], iteration_bounds = array<i64: 2, 2>, scalar_prefetch = 0 : i64, scratch_operands = 2 : i64, tpu.core_type = #tpu.core_type<tc>, window_params = [{transform_indices = @transform_0, window_bounds = array<i64: 2, 8, 128>}, {pipeline_mode = #tpu.pipeline_mode<synchronous>, transform_indices = @transform_1, window_bounds = array<i64: 128, 128>}, {transform_indices = @transform_2, window_bounds = array<i64: 1, 128, 128>}, {transform_indices = @transform_3, window_bounds = array<i64: 1, 128, 128>}, {transform_indices = @transform_4, window_bounds = array<i64: 1, 128, 128>}, {transform_indices = @transform_5, window_bounds = array<i64: 1, 128, 128>}, {transform_indices = @transform_6, window_bounds = array<i64: 1, 128, 2048>}, {transform_indices = @transform_7, window_bounds = array<i64: 1, 2048, 128>}, {transform_indices = @transform_8, window_bounds = array<i64: 1, 9, 128>}, {transform_indices = @transform_9, window_bounds = array<i64: 1, 1, 2048>}, {transform_indices = @transform_10, window_bounds = array<i64: 2, 8, 128>}]} {
    %c0_i32 = arith.constant 0 : i32
    %0 = arith.cmpi eq, %arg1, %c0_i32 : i32
    %1 = arith.extui %0 : i1 to i32
    %c0_i32_0 = arith.constant 0 : i32
    %2 = arith.cmpi ne, %1, %c0_i32_0 : i32
    scf.if %2 {
      %c0_75 = arith.constant 0 : index
      %c0_76 = arith.constant 0 : index
      %c0_77 = arith.constant 0 : index
      %163 = vector.load %arg2[%c0_75, %c0_76, %c0_77] : memref<2x8x128xf32, #tpu.memory_space<vmem>>, vector<2x8x128xf32>
      %164 = vector.shape_cast %163 : vector<2x8x128xf32> to vector<16x128xf32>
      %c0_78 = arith.constant 0 : index
      %c0_79 = arith.constant 0 : index
      %165 = vector.load %arg13[%c0_78, %c0_79] : memref<16x128xf32, #tpu.memory_space<vmem>>, vector<16x128xf32>
      tpu.vector_store %arg13[%c0_78, %c0_79], %164 {strides = array<i32>} : memref<16x128xf32, #tpu.memory_space<vmem>>, vector<16x128xf32>,
    } else {
    }
    %c0 = arith.constant 0 : index
    %c0_1 = arith.constant 0 : index
    %3 = vector.load %arg13[%c0, %c0_1] : memref<16x128xf32, #tpu.memory_space<vmem>>, vector<16x128xf32>
    %4 = arith.truncf %3 : vector<16x128xf32> to vector<16x128xbf16>
    %c0_2 = arith.constant 0 : index
    %c0_3 = arith.constant 0 : index
    %c0_4 = arith.constant 0 : index
    %5 = vector.load %arg4[%c0_2, %c0_3, %c0_4] : memref<1x128x128xbf16, #tpu.memory_space<vmem>>, vector<1x128x128xbf16>
    %6 = vector.shape_cast %5 : vector<1x128x128xbf16> to vector<128x128xbf16>
    %cst = arith.constant dense<0.000000e+00> : vector<16x128xf32>
    %7 = tpu.matmul %4, %6, %cst {dimension_numbers = #tpu.dot_dimension_numbers<[1], [0], [0], [1], [0, 0, 1, 1], [], []>} : vector<16x128xbf16>, vector<128x128xbf16>, vector<16x128xf32> -> vector<16x128xf32>
    %c0_5 = arith.constant 0 : index
    %c0_6 = arith.constant 0 : index
    %c0_7 = arith.constant 0 : index
    %8 = vector.load %arg10[%c0_5, %c0_6, %c0_7] : memref<1x9x128xf32, #tpu.memory_space<vmem>>, vector<1x1x128xf32>
    %9 = vector.shape_cast %8 : vector<1x1x128xf32> to vector<1x128xf32>
    %10 = vector.broadcast %9 : vector<1x128xf32> to vector<16x128xf32>
    %11 = arith.addf %7, %10 : vector<16x128xf32>
    %c0_8 = arith.constant 0 : index
    %c0_9 = arith.constant 0 : index
    %c0_10 = arith.constant 0 : index
    %12 = vector.load %arg5[%c0_8, %c0_9, %c0_10] : memref<1x128x128xbf16, #tpu.memory_space<vmem>>, vector<1x128x128xbf16>
    %13 = vector.shape_cast %12 : vector<1x128x128xbf16> to vector<128x128xbf16>
    %cst_11 = arith.constant dense<0.000000e+00> : vector<16x128xf32>
    %14 = tpu.matmul %4, %13, %cst_11 {dimension_numbers = #tpu.dot_dimension_numbers<[1], [0], [0], [1], [0, 0, 1, 1], [], []>} : vector<16x128xbf16>, vector<128x128xbf16>, vector<16x128xf32> -> vector<16x128xf32>
    %c0_12 = arith.constant 0 : index
    %c1 = arith.constant 1 : index
    %c0_13 = arith.constant 0 : index
    %15 = vector.load %arg10[%c0_12, %c1, %c0_13] : memref<1x9x128xf32, #tpu.memory_space<vmem>>, vector<1x1x128xf32>
    %16 = vector.shape_cast %15 : vector<1x1x128xf32> to vector<1x128xf32>
    %17 = vector.broadcast %16 : vector<1x128xf32> to vector<16x128xf32>
    %18 = arith.addf %14, %17 : vector<16x128xf32>
    %c0_14 = arith.constant 0 : index
    %c0_15 = arith.constant 0 : index
    %c0_16 = arith.constant 0 : index
    %19 = vector.load %arg6[%c0_14, %c0_15, %c0_16] : memref<1x128x128xbf16, #tpu.memory_space<vmem>>, vector<1x128x128xbf16>
    %20 = vector.shape_cast %19 : vector<1x128x128xbf16> to vector<128x128xbf16>
    %cst_17 = arith.constant dense<0.000000e+00> : vector<16x128xf32>
    %21 = tpu.matmul %4, %20, %cst_17 {dimension_numbers = #tpu.dot_dimension_numbers<[1], [0], [0], [1], [0, 0, 1, 1], [], []>} : vector<16x128xbf16>, vector<128x128xbf16>, vector<16x128xf32> -> vector<16x128xf32>
    %c0_18 = arith.constant 0 : index
    %c2 = arith.constant 2 : index
    %c0_19 = arith.constant 0 : index
    %22 = vector.load %arg10[%c0_18, %c2, %c0_19] : memref<1x9x128xf32, #tpu.memory_space<vmem>>, vector<1x1x128xf32>
    %23 = vector.shape_cast %22 : vector<1x1x128xf32> to vector<1x128xf32>
    %24 = vector.broadcast %23 : vector<1x128xf32> to vector<16x128xf32>
    %25 = arith.addf %21, %24 : vector<16x128xf32>
    %c0_20 = arith.constant 0 : index
    %c0_21 = arith.constant 0 : index
    %26 = vector.load %arg3[%c0_20, %c0_21] : memref<128x128xbf16, #tpu.memory_space<vmem>>, vector<128x128xbf16>
    %27 = vector.extract_strided_slice %11 {offsets = [0, 0], sizes = [8, 128], strides = [1, 1]} : vector<16x128xf32> to vector<8x128xf32>
    %28 = vector.extract_strided_slice %18 {offsets = [0, 0], sizes = [8, 128], strides = [1, 1]} : vector<16x128xf32> to vector<8x128xf32>
    %29 = arith.mulf %27, %28 : vector<8x128xf32>
    %30 = arith.truncf %29 : vector<8x128xf32> to vector<8x128xbf16>
    %cst_22 = arith.constant dense<0.000000e+00> : vector<8x128xf32>
    %31 = tpu.matmul %30, %26, %cst_22 {dimension_numbers = #tpu.dot_dimension_numbers<[1], [0], [0], [1], [0, 0, 1, 1], [], []>} : vector<8x128xbf16>, vector<128x128xbf16>, vector<8x128xf32> -> vector<8x128xf32>
    %cst_23 = arith.constant 1.000000e+00 : f32
    %32 = vector.broadcast %cst_23 : f32 to vector<8x128xf32>
    %33 = vector.extract_strided_slice %25 {offsets = [0, 0], sizes = [8, 128], strides = [1, 1]} : vector<16x128xf32> to vector<8x128xf32>
    %34 = vector.extract_strided_slice %18 {offsets = [8, 0], sizes = [8, 128], strides = [1, 1]} : vector<16x128xf32> to vector<8x128xf32>
    %35 = arith.mulf %27, %34 : vector<8x128xf32>
    %36 = arith.truncf %35 : vector<8x128xf32> to vector<8x128xbf16>
    %cst_24 = arith.constant dense<0.000000e+00> : vector<8x128xf32>
    %37 = tpu.matmul %36, %26, %cst_24 {dimension_numbers = #tpu.dot_dimension_numbers<[1], [0], [0], [1], [0, 0, 1, 1], [], []>} : vector<8x128xbf16>, vector<128x128xbf16>, vector<8x128xf32> -> vector<8x128xf32>
    %38 = arith.maximumf %31, %37 : vector<8x128xf32>
    %39 = arith.subf %31, %38 : vector<8x128xf32>
    %40 = math.exp %39 : vector<8x128xf32>
    %41 = arith.subf %37, %38 : vector<8x128xf32>
    %42 = math.exp %41 : vector<8x128xf32>
    %43 = arith.mulf %40, %32 : vector<8x128xf32>
    %44 = arith.addf %43, %42 : vector<8x128xf32>
    %45 = arith.mulf %40, %33 : vector<8x128xf32>
    %46 = vector.extract_strided_slice %25 {offsets = [8, 0], sizes = [8, 128], strides = [1, 1]} : vector<16x128xf32> to vector<8x128xf32>
    %47 = arith.mulf %42, %46 : vector<8x128xf32>
    %48 = arith.addf %45, %47 : vector<8x128xf32>
    %49 = tpu.reciprocal %44 {approx = true} : vector<8x128xf32> -> vector<8x128xf32>
    %50 = arith.mulf %48, %49 : vector<8x128xf32>
    %51 = arith.truncf %50 : vector<8x128xf32> to vector<8x128xbf16>
    %c0_25 = arith.constant 0 : index
    %c0_26 = arith.constant 0 : index
    %52 = vector.load %arg14[%c0_25, %c0_26] : memref<16x128xbf16, #tpu.memory_space<vmem>>, vector<8x128xbf16>
    tpu.vector_store %arg14[%c0_25, %c0_26], %51 {strides = array<i32>} : memref<16x128xbf16, #tpu.memory_space<vmem>>, vector<8x128xbf16>,
    %53 = vector.extract_strided_slice %11 {offsets = [8, 0], sizes = [8, 128], strides = [1, 1]} : vector<16x128xf32> to vector<8x128xf32>
    %54 = vector.extract_strided_slice %18 {offsets = [0, 0], sizes = [8, 128], strides = [1, 1]} : vector<16x128xf32> to vector<8x128xf32>
    %55 = arith.mulf %53, %54 : vector<8x128xf32>
    %56 = arith.truncf %55 : vector<8x128xf32> to vector<8x128xbf16>
    %cst_27 = arith.constant dense<0.000000e+00> : vector<8x128xf32>
    %57 = tpu.matmul %56, %26, %cst_27 {dimension_numbers = #tpu.dot_dimension_numbers<[1], [0], [0], [1], [0, 0, 1, 1], [], []>} : vector<8x128xbf16>, vector<128x128xbf16>, vector<8x128xf32> -> vector<8x128xf32>
    %cst_28 = arith.constant 1.000000e+00 : f32
    %58 = vector.broadcast %cst_28 : f32 to vector<8x128xf32>
    %59 = vector.extract_strided_slice %25 {offsets = [0, 0], sizes = [8, 128], strides = [1, 1]} : vector<16x128xf32> to vector<8x128xf32>
    %60 = vector.extract_strided_slice %18 {offsets = [8, 0], sizes = [8, 128], strides = [1, 1]} : vector<16x128xf32> to vector<8x128xf32>
    %61 = arith.mulf %53, %60 : vector<8x128xf32>
    %62 = arith.truncf %61 : vector<8x128xf32> to vector<8x128xbf16>
    %cst_29 = arith.constant dense<0.000000e+00> : vector<8x128xf32>
    %63 = tpu.matmul %62, %26, %cst_29 {dimension_numbers = #tpu.dot_dimension_numbers<[1], [0], [0], [1], [0, 0, 1, 1], [], []>} : vector<8x128xbf16>, vector<128x128xbf16>, vector<8x128xf32> -> vector<8x128xf32>
    %64 = arith.maximumf %57, %63 : vector<8x128xf32>
    %65 = arith.subf %57, %64 : vector<8x128xf32>
    %66 = math.exp %65 : vector<8x128xf32>
    %67 = arith.subf %63, %64 : vector<8x128xf32>
    %68 = math.exp %67 : vector<8x128xf32>
    %69 = arith.mulf %66, %58 : vector<8x128xf32>
    %70 = arith.addf %69, %68 : vector<8x128xf32>
    %71 = arith.mulf %66, %59 : vector<8x128xf32>
    %72 = vector.extract_strided_slice %25 {offsets = [8, 0], sizes = [8, 128], strides = [1, 1]} : vector<16x128xf32> to vector<8x128xf32>
    %73 = arith.mulf %68, %72 : vector<8x128xf32>
    %74 = arith.addf %71, %73 : vector<8x128xf32>
    %75 = tpu.reciprocal %70 {approx = true} : vector<8x128xf32> -> vector<8x128xf32>
    %76 = arith.mulf %74, %75 : vector<8x128xf32>
    %77 = arith.truncf %76 : vector<8x128xf32> to vector<8x128xbf16>
    %c8 = arith.constant 8 : index
    %c0_30 = arith.constant 0 : index
    %78 = vector.load %arg14[%c8, %c0_30] : memref<16x128xbf16, #tpu.memory_space<vmem>>, vector<8x128xbf16>
    tpu.vector_store %arg14[%c8, %c0_30], %77 {strides = array<i32>} : memref<16x128xbf16, #tpu.memory_space<vmem>>, vector<8x128xbf16>,
    %c0_31 = arith.constant 0 : index
    %c0_32 = arith.constant 0 : index
    %79 = vector.load %arg14[%c0_31, %c0_32] : memref<16x128xbf16, #tpu.memory_space<vmem>>, vector<16x128xbf16>
    %c0_33 = arith.constant 0 : index
    %c0_34 = arith.constant 0 : index
    %c0_35 = arith.constant 0 : index
    %80 = vector.load %arg7[%c0_33, %c0_34, %c0_35] : memref<1x128x128xbf16, #tpu.memory_space<vmem>>, vector<1x128x128xbf16>
    %81 = vector.shape_cast %80 : vector<1x128x128xbf16> to vector<128x128xbf16>
    %cst_36 = arith.constant dense<0.000000e+00> : vector<16x128xf32>
    %82 = tpu.matmul %79, %81, %cst_36 {dimension_numbers = #tpu.dot_dimension_numbers<[1], [0], [0], [1], [0, 0, 1, 1], [], []>} : vector<16x128xbf16>, vector<128x128xbf16>, vector<16x128xf32> -> vector<16x128xf32>
    %c0_37 = arith.constant 0 : index
    %c3 = arith.constant 3 : index
    %c0_38 = arith.constant 0 : index
    %83 = vector.load %arg10[%c0_37, %c3, %c0_38] : memref<1x9x128xf32, #tpu.memory_space<vmem>>, vector<1x1x128xf32>
    %84 = vector.shape_cast %83 : vector<1x1x128xf32> to vector<1x128xf32>
    %85 = vector.broadcast %84 : vector<1x128xf32> to vector<16x128xf32>
    %86 = arith.addf %82, %85 : vector<16x128xf32>
    %87 = arith.addf %3, %86 : vector<16x128xf32>
    %c0_39 = arith.constant 0 : index
    %c5 = arith.constant 5 : index
    %c0_40 = arith.constant 0 : index
    %88 = vector.load %arg10[%c0_39, %c5, %c0_40] : memref<1x9x128xf32, #tpu.memory_space<vmem>>, vector<1x1x128xf32>
    %89 = vector.shape_cast %88 : vector<1x1x128xf32> to vector<1x128xf32>
    %c0_41 = arith.constant 0 : index
    %c6 = arith.constant 6 : index
    %c0_42 = arith.constant 0 : index
    %90 = vector.load %arg10[%c0_41, %c6, %c0_42] : memref<1x9x128xf32, #tpu.memory_space<vmem>>, vector<1x1x128xf32>
    %91 = vector.shape_cast %90 : vector<1x1x128xf32> to vector<1x128xf32>
    %cst_43 = arith.constant dense<0.000000e+00> : vector<16xf32>
    %92 = vector.multi_reduction <add>, %87, %cst_43 [1] : vector<16x128xf32> to vector<16xf32>
    %93 = vector.shape_cast %92 : vector<16xf32> to vector<16x1xf32>
    %cst_44 = arith.constant 1.280000e+02 : f32
    %94 = vector.broadcast %cst_44 : f32 to vector<16x1xf32>
    %95 = arith.divf %93, %94 : vector<16x1xf32>
    %96 = vector.broadcast %95 : vector<16x1xf32> to vector<16x128xf32>
    %97 = arith.subf %87, %96 : vector<16x128xf32>
    %98 = arith.mulf %97, %97 : vector<16x128xf32>
    %cst_45 = arith.constant dense<0.000000e+00> : vector<16xf32>
    %99 = vector.multi_reduction <add>, %98, %cst_45 [1] : vector<16x128xf32> to vector<16xf32>
    %100 = vector.shape_cast %99 : vector<16xf32> to vector<16x1xf32>
    %cst_46 = arith.constant 1.280000e+02 : f32
    %101 = vector.broadcast %cst_46 : f32 to vector<16x1xf32>
    %102 = arith.divf %100, %101 : vector<16x1xf32>
    %103 = vector.broadcast %95 : vector<16x1xf32> to vector<16x128xf32>
    %104 = arith.subf %87, %103 : vector<16x128xf32>
    %cst_47 = arith.constant 9.99999974E-6 : f32
    %105 = vector.broadcast %cst_47 : f32 to vector<16x1xf32>
    %106 = arith.addf %102, %105 : vector<16x1xf32>
    %107 = math.rsqrt %106 : vector<16x1xf32>
    %108 = vector.broadcast %107 : vector<16x1xf32> to vector<16x128xf32>
    %109 = arith.mulf %104, %108 : vector<16x128xf32>
    %110 = vector.broadcast %89 : vector<1x128xf32> to vector<16x128xf32>
    %111 = arith.mulf %109, %110 : vector<16x128xf32>
    %112 = vector.broadcast %91 : vector<1x128xf32> to vector<16x128xf32>
    %113 = arith.addf %111, %112 : vector<16x128xf32>
    %114 = arith.truncf %113 : vector<16x128xf32> to vector<16x128xbf16>
    %c0_48 = arith.constant 0 : index
    %c0_49 = arith.constant 0 : index
    %c0_50 = arith.constant 0 : index
    %115 = vector.load %arg8[%c0_48, %c0_49, %c0_50] : memref<1x128x2048xbf16, #tpu.memory_space<vmem>>, vector<1x128x2048xbf16>
    %116 = vector.shape_cast %115 : vector<1x128x2048xbf16> to vector<128x2048xbf16>
    %cst_51 = arith.constant dense<0.000000e+00> : vector<16x2048xf32>
    %117 = tpu.matmul %114, %116, %cst_51 {dimension_numbers = #tpu.dot_dimension_numbers<[1], [0], [0], [1], [0, 0, 1, 1], [], []>} : vector<16x128xbf16>, vector<128x2048xbf16>, vector<16x2048xf32> -> vector<16x2048xf32>
    %c0_52 = arith.constant 0 : index
    %c0_53 = arith.constant 0 : index
    %c0_54 = arith.constant 0 : index
    %118 = vector.load %arg11[%c0_52, %c0_53, %c0_54] : memref<1x1x2048xf32, #tpu.memory_space<vmem>>, vector<1x1x2048xf32>
    %119 = vector.shape_cast %118 : vector<1x1x2048xf32> to vector<1x2048xf32>
    %120 = vector.broadcast %119 : vector<1x2048xf32> to vector<16x2048xf32>
    %121 = arith.addf %117, %120 : vector<16x2048xf32>
    %cst_55 = arith.constant 0.000000e+00 : f32
    %122 = vector.broadcast %cst_55 : f32 to vector<16x2048xf32>
    %123 = arith.maximumf %121, %122 : vector<16x2048xf32>
    %124 = arith.truncf %123 : vector<16x2048xf32> to vector<16x2048xbf16>
    %c0_56 = arith.constant 0 : index
    %c0_57 = arith.constant 0 : index
    %c0_58 = arith.constant 0 : index
    %125 = vector.load %arg9[%c0_56, %c0_57, %c0_58] : memref<1x2048x128xbf16, #tpu.memory_space<vmem>>, vector<1x2048x128xbf16>
    %126 = vector.shape_cast %125 : vector<1x2048x128xbf16> to vector<2048x128xbf16>
    %cst_59 = arith.constant dense<0.000000e+00> : vector<16x128xf32>
    %127 = tpu.matmul %124, %126, %cst_59 {dimension_numbers = #tpu.dot_dimension_numbers<[1], [0], [0], [1], [0, 0, 1, 1], [], []>} : vector<16x2048xbf16>, vector<2048x128xbf16>, vector<16x128xf32> -> vector<16x128xf32>
    %c0_60 = arith.constant 0 : index
    %c4 = arith.constant 4 : index
    %c0_61 = arith.constant 0 : index
    %128 = vector.load %arg10[%c0_60, %c4, %c0_61] : memref<1x9x128xf32, #tpu.memory_space<vmem>>, vector<1x1x128xf32>
    %129 = vector.shape_cast %128 : vector<1x1x128xf32> to vector<1x128xf32>
    %130 = vector.broadcast %129 : vector<1x128xf32> to vector<16x128xf32>
    %131 = arith.addf %127, %130 : vector<16x128xf32>
    %132 = arith.addf %113, %131 : vector<16x128xf32>
    %c0_62 = arith.constant 0 : index
    %c7 = arith.constant 7 : index
    %c0_63 = arith.constant 0 : index
    %133 = vector.load %arg10[%c0_62, %c7, %c0_63] : memref<1x9x128xf32, #tpu.memory_space<vmem>>, vector<1x1x128xf32>
    %134 = vector.shape_cast %133 : vector<1x1x128xf32> to vector<1x128xf32>
    %c0_64 = arith.constant 0 : index
    %c8_65 = arith.constant 8 : index
    %c0_66 = arith.constant 0 : index
    %135 = vector.load %arg10[%c0_64, %c8_65, %c0_66] : memref<1x9x128xf32, #tpu.memory_space<vmem>>, vector<1x1x128xf32>
    %136 = vector.shape_cast %135 : vector<1x1x128xf32> to vector<1x128xf32>
    %cst_67 = arith.constant dense<0.000000e+00> : vector<16xf32>
    %137 = vector.multi_reduction <add>, %132, %cst_67 [1] : vector<16x128xf32> to vector<16xf32>
    %138 = vector.shape_cast %137 : vector<16xf32> to vector<16x1xf32>
    %cst_68 = arith.constant 1.280000e+02 : f32
    %139 = vector.broadcast %cst_68 : f32 to vector<16x1xf32>
    %140 = arith.divf %138, %139 : vector<16x1xf32>
    %141 = vector.broadcast %140 : vector<16x1xf32> to vector<16x128xf32>
    %142 = arith.subf %132, %141 : vector<16x128xf32>
    %143 = arith.mulf %142, %142 : vector<16x128xf32>
    %cst_69 = arith.constant dense<0.000000e+00> : vector<16xf32>
    %144 = vector.multi_reduction <add>, %143, %cst_69 [1] : vector<16x128xf32> to vector<16xf32>
    %145 = vector.shape_cast %144 : vector<16xf32> to vector<16x1xf32>
    %cst_70 = arith.constant 1.280000e+02 : f32
    %146 = vector.broadcast %cst_70 : f32 to vector<16x1xf32>
    %147 = arith.divf %145, %146 : vector<16x1xf32>
    %148 = vector.broadcast %140 : vector<16x1xf32> to vector<16x128xf32>
    %149 = arith.subf %132, %148 : vector<16x128xf32>
    %cst_71 = arith.constant 9.99999974E-6 : f32
    %150 = vector.broadcast %cst_71 : f32 to vector<16x1xf32>
    %151 = arith.addf %147, %150 : vector<16x1xf32>
    %152 = math.rsqrt %151 : vector<16x1xf32>
    %153 = vector.broadcast %152 : vector<16x1xf32> to vector<16x128xf32>
    %154 = arith.mulf %149, %153 : vector<16x128xf32>
    %155 = vector.broadcast %134 : vector<1x128xf32> to vector<16x128xf32>
    %156 = arith.mulf %154, %155 : vector<16x128xf32>
    %157 = vector.broadcast %136 : vector<1x128xf32> to vector<16x128xf32>
    %158 = arith.addf %156, %157 : vector<16x128xf32>
    %c0_72 = arith.constant 0 : index
    %c0_73 = arith.constant 0 : index
    %159 = vector.load %arg13[%c0_72, %c0_73] : memref<16x128xf32, #tpu.memory_space<vmem>>, vector<16x128xf32>
    tpu.vector_store %arg13[%c0_72, %c0_73], %158 {strides = array<i32>} : memref<16x128xf32, #tpu.memory_space<vmem>>, vector<16x128xf32>,
    %c1_i32 = arith.constant 1 : i32
    %160 = arith.cmpi eq, %arg1, %c1_i32 : i32
    %161 = arith.extui %160 : i1 to i32
    %c0_i32_74 = arith.constant 0 : i32
    %162 = arith.cmpi ne, %161, %c0_i32_74 : i32
    scf.if %162 {
      %163 = vector.shape_cast %158 : vector<16x128xf32> to vector<2x8x128xf32>
      %c0_75 = arith.constant 0 : index
      %c0_76 = arith.constant 0 : index
      %c0_77 = arith.constant 0 : index
      %164 = vector.load %arg12[%c0_75, %c0_76, %c0_77] : memref<2x8x128xf32, #tpu.memory_space<vmem>>, vector<2x8x128xf32>
      tpu.vector_store %arg12[%c0_75, %c0_76, %c0_77], %163 {strides = array<i32>} : memref<2x8x128xf32, #tpu.memory_space<vmem>>, vector<2x8x128xf32>,
    } else {
    }
    return
  }
  func.func @transform_0(%arg0: i32, %arg1: i32) -> (i32, i32, i32) {
    %c0_i32 = arith.constant 0 : i32
    %c0_i32_0 = arith.constant 0 : i32
    %c0_i32_1 = arith.constant 0 : i32
    return %c0_i32, %arg0, %c0_i32_0 : i32, i32, i32
  }
  func.func @transform_1(%arg0: i32, %arg1: i32) -> (i32, i32) {
    %c0_i32 = arith.constant 0 : i32
    %c0_i32_0 = arith.constant 0 : i32
    %c0_i32_1 = arith.constant 0 : i32
    return %c0_i32, %c0_i32_0 : i32, i32
  }
  func.func @transform_2(%arg0: i32, %arg1: i32) -> (i32, i32, i32) {
    %c0_i32 = arith.constant 0 : i32
    %c0_i32_0 = arith.constant 0 : i32
    %c0_i32_1 = arith.constant 0 : i32
    return %arg1, %c0_i32, %c0_i32_0 : i32, i32, i32
  }
  func.func @transform_3(%arg0: i32, %arg1: i32) -> (i32, i32, i32) {
    %c0_i32 = arith.constant 0 : i32
    %c0_i32_0 = arith.constant 0 : i32
    %c0_i32_1 = arith.constant 0 : i32
    return %arg1, %c0_i32, %c0_i32_0 : i32, i32, i32
  }
  func.func @transform_4(%arg0: i32, %arg1: i32) -> (i32, i32, i32) {
    %c0_i32 = arith.constant 0 : i32
    %c0_i32_0 = arith.constant 0 : i32
    %c0_i32_1 = arith.constant 0 : i32
    return %arg1, %c0_i32, %c0_i32_0 : i32, i32, i32
  }
  func.func @transform_5(%arg0: i32, %arg1: i32) -> (i32, i32, i32) {
    %c0_i32 = arith.constant 0 : i32
    %c0_i32_0 = arith.constant 0 : i32
    %c0_i32_1 = arith.constant 0 : i32
    return %arg1, %c0_i32, %c0_i32_0 : i32, i32, i32
  }
  func.func @transform_6(%arg0: i32, %arg1: i32) -> (i32, i32, i32) {
    %c0_i32 = arith.constant 0 : i32
    %c0_i32_0 = arith.constant 0 : i32
    %c0_i32_1 = arith.constant 0 : i32
    return %arg1, %c0_i32, %c0_i32_0 : i32, i32, i32
  }
  func.func @transform_7(%arg0: i32, %arg1: i32) -> (i32, i32, i32) {
    %c0_i32 = arith.constant 0 : i32
    %c0_i32_0 = arith.constant 0 : i32
    %c0_i32_1 = arith.constant 0 : i32
    return %arg1, %c0_i32, %c0_i32_0 : i32, i32, i32
  }
  func.func @transform_8(%arg0: i32, %arg1: i32) -> (i32, i32, i32) {
    %c0_i32 = arith.constant 0 : i32
    %c0_i32_0 = arith.constant 0 : i32
    %c0_i32_1 = arith.constant 0 : i32
    return %arg1, %c0_i32, %c0_i32_0 : i32, i32, i32
  }
  func.func @transform_9(%arg0: i32, %arg1: i32) -> (i32, i32, i32) {
    %c0_i32 = arith.constant 0 : i32
    %c0_i32_0 = arith.constant 0 : i32
    %c0_i32_1 = arith.constant 0 : i32
    return %arg1, %c0_i32, %c0_i32_0 : i32, i32, i32
  }
  func.func @transform_10(%arg0: i32, %arg1: i32) -> (i32, i32, i32) {
    %c0_i32 = arith.constant 0 : i32
    %c0_i32_0 = arith.constant 0 : i32
    %c0_i32_1 = arith.constant 0 : i32
    return %c0_i32, %arg0, %c0_i32_0 : i32, i32, i32
  }
}

</mosaic_0001>

<bundles_post_ra>
// kernel: long_rope_forward.1
= control target key start
LH: loop header
LB: loop body
LE: loop exit
PB: predicated region body
PF: predicated region fallthrough
CT: control target
= control target key end

     0   :  { %s6340_s0 = inlined_call_operand.vmem [shape: f32[2,16,128], index: 0, kind: input, shape index: {}]   ;;  %s6341_s1 = inlined_call_operand.vmem [shape: bf16[128,128], index: 1, kind: input, shape index: {}]   ;;  %s6342_s2 = inlined_call_operand.vmem [shape: bf16[2,128,128], index: 2, kind: input, shape index: {}]   ;;  %s6343_s3 = inlined_call_operand.vmem [shape: bf16[2,128,128], index: 3, kind: input, shape index: {}]   ;;  %s6344_s4 = inlined_call_operand.vmem [shape: bf16[2,128,128], index: 4, kind: input, shape index: {}]   ;;  %s6345_s5 = inlined_call_operand.vmem [shape: bf16[2,128,128], index: 5, kind: input, shape index: {}]   ;;  %s6346_s6 = inlined_call_operand.hbm [shape: bf16[2,128,2048], index: 6, kind: input, shape index: {}]   ;;  %s6347_s7 = inlined_call_operand.hbm [shape: bf16[2,2048,128], index: 7, kind: input, shape index: {}]   ;;  %s6348_s8 = inlined_call_operand.vmem [shape: f32[2,9,128], index: 8, kind: input, shape index: {}]   ;;  %s6349_s9 = inlined_call_operand.vmem [shape: f32[2,1,2048], index: 9, kind: input, shape index: {}]   ;;  %s6350_s10 = inlined_call_operand.hbm [shape: f32[2,16,128], index: 10, kind: output, shape index: {}]  }
   0x1   :  { %6364 = sst [smem:[#allocation26_spill]] %s6340_s0 }
   0x2   :  { %6365 = sst [smem:[#allocation27_spill]] %s6341_s1 }
   0x3   :  { %6366 = sst [smem:[#allocation28_spill]] %s6342_s2 }
   0x4   :  { %6367 = sst [smem:[#allocation29_spill]] %s6346_s6 }
   0x5   :  { %6368 = sst [smem:[#allocation30_spill]] %s6350_s10 }
   0x6   :  { %15 = vsyncpa [#allocation6], 0 }
   0x7   :  { %17 = vsyncpa [#allocation6 + $0x1], 0 }
   0x8   :  { %18 = vsyncpa [#allocation9], 0 }
   0x9   :  { %20 = vsyncpa [#allocation9 + $0x1], 0 }
   0xa   :  { %21 = vsyncpa [#allocation7], 0 }
   0xb   :  { %23 = vsyncpa [#allocation7 + $0x1], 0  ;;  %s5524_s13 = smov 0   ;;  %s5526_s14 = smov 0  }
   0xc   :  { %s5528_s15 = smov 0   ;;  %s5530_s16 = smov 0  }
   0xd   :  { %s5532_s17 = smov 0   ;;  %s5534_s18 = smov 0  }
   0xe   :  { %s5536_s19 = smov 0   ;;  %s5538_s20 = smov 0  }
   0xf   :  { %s5540_s21 = smov 0   ;;  %s5542_s22 = smov 0  }
  0x10   :  { %s5544_s23 = smov 0  }
  0x11 LB: > { %6369 = sst [smem:[#allocation14_spill]] %s5415_s13  ;;  %s4225_s24 = sadd.s32 4294967295, %s5455_s23   ;;  %s5455_s23 = sphi %s5544_s23, %s29_s23   ;;  %s5451_s22 = sphi %s5542_s22, %s6404_s22   ;;  %s5447_s21 = sphi %s5540_s21, %s6409_s21   ;;  %s5443_s20 = sphi %s5538_s20, %s6402_s20   ;;  %s5439_s19 = sphi %s5536_s19, %s6401_s19   ;;  %s5435_s18 = sphi %s5534_s18, %s6400_s18   ;;  %s5431_s17 = sphi %s5532_s17, %s6408_s17   ;;  %s5427_s16 = sphi %s5530_s16, %s6398_s16   ;;  %s5423_s15 = sphi %s5528_s15, %s6407_s15   ;;  %s5419_s14 = sphi %s5526_s14, %s6406_s14   ;;  %s5415_s13 = sphi %s5524_s13, %s6405_s13  }
  0x12   : > { %6370 = sst [smem:[#allocation15_spill]] %s5427_s16  ;;  %s4226_s25 = sadd.s32 4294967294, %s5455_s23  }
  0x13   : > { %6371 = sst [smem:[#allocation16_spill]] %s5435_s18  ;;  %s38_s26 = sadd.s32 1, %s5447_s21 }
  0x14   : > { %6372 = sst [smem:[#allocation17_spill]] %s5443_s20  ;;  %s41_s27 = sadd.s32 1, %s5451_s22 }
  0x15   : > { %6373 = sst [smem:[#allocation18_spill]] %s5447_s21  ;;  %p39_p0 = scmp.ge.s32.totalorder %s38_s26, 2 }
  0x16   : > { %6374 = sst [smem:[#allocation19_spill]] %s5451_s22  ;;  %s48_s28 = sadd.s32 1, %s5435_s18 }
  0x17   : > { %p55_p1 = scmp.ne.s32.totalorder %s5435_s18, %s5431_s17  ;;  %p56_p2 = scmp.eq.s32.totalorder %s5455_s23, 0 }
  0x18   : > { %s6411_s26 = smov (%p39_p0, %s38_s26), 0  ;;  %s6413_s27 = smov (!%p39_p0, %s41_s27), %s5451_s22 }
  0x19   : > { %6375 = sst [smem:[#allocation20_spill]] %s6411_s26  ;;  %p5593_p3 = por %p56_p2, %p55_p1 }
  0x1a   : > { %s196_s30 = ssub.s32 %s5447_s21, %s6411_s26  ;;  %p43_p4 = scmp.ge.s32.totalorder %s6413_s27, 2 }
  0x1b   : > { %p197_p5 = scmp.eq.s32.totalorder %s196_s30, 0  ;;  %s199_s11 = sadd.s32 1, %s5427_s16 }
  0x1c   : > { %p206_p6 = scmp.ne.s32.totalorder %s5427_s16, %s5423_s15  ;;  %s6415_s27 = smov (%p43_p4, %s6413_s27), 0 }
  0x1d   : > { %6377 = sst [smem:[#allocation21_spill]] %s6415_s27  ;;  %s45_s10 = ssub.s32 %s5451_s22, %s6415_s27 }
  0x1e   : > { %s5605_s12 = scalar_select %p197_p5, %s5427_s16, %s199_s11  }
  0x1f   : > { %p5609_p7 = por %p206_p6, %p56_p2  ;;  %p46_p8 = scmp.eq.s32.totalorder %s45_s10, 0 }
  0x20   : > { %6378 = sst [smem:[#allocation22_spill]] %s5605_s12  ;;  %p212_p9 = scmp.ne.s32.totalorder %s5423_s15, %s5419_s14 }
  0x21   : > { %p213_p10 = scmp.eq.s32.totalorder %s4225_s24, 0  ;;  %p314_p11 = scmp.eq.s32.totalorder %s4225_s24, 3 }
  0x22   : > { %s5616_s26 = scalar_select %p46_p8, %s5435_s18, %s48_s28  }
  0x23   : > { %p5618_p12 = por %p213_p10, %p212_p9  ;;  %p5625_p13 = por %p314_p11, %p55_p1 }
  0x24   : > { %6380 = sst [smem:[#allocation23_spill]] %s5616_s26  ;;  %p319_p0 = scmp.ne.s32.totalorder %s5431_s17, %s5415_s13 }
  0x25   : > { %s6382_s1 = scalar_select %p5625_p13, 1, 0 }
  0x26   : > { %p320_p2 = scmp.eq.s32.totalorder %s4226_s25, 3  ;;  %p4228_p5 = scmp.ge.s32.totalorder %s5455_s23, 4 }
  0x27   : > { %6383 = sst [smem:[#allocation24_spill]] %s6382_s1 }
  0x28   : > { %p5631_p4 = por %p320_p2, %p319_p0  ;;  %339 = sbr.rel (%p4228_p5) target bundleno = 86 (0x56), region = 20 }
  0x2a   : > { %s6384_s11 = scalar_select %p5631_p4, 1, 0 }
  0x2c   : > { %6385 = sst [smem:[#allocation25_spill]] %s6384_s11 }
  0x2d   : > { %342 = sbr.rel (!%p5593_p3) target bundleno = 56 (0x38), region = 24  ;;  %s344_s10 = sand.u32 (%p5593_p3), 1, %s5435_s18  }
  0x2e   : > { %s4230_s14 = sshll.u32 (%p5593_p3), %s5451_s22, 3  ;;  %s4229_s24 = sshll.u32 (%p5593_p3), %s344_s10, 4 }
  0x2f   : > { %s6386_s0 = sld [smem:[#allocation26_spill]] (%p5593_p3)  ;;  %s346_s25 = scalar_lea.vmem (%p5593_p3), [#allocation4], %s4229_s24 }
  0x35   : > { %s348_s26 = scalar_lea.vmem %s6386_s0, %s4230_s14 }
  0x36   : > { %v379_v0 = vld [vmem:[%s348_s26] sm:$0xff]  ;;  %v381_v1 = vld [vmem:[%s348_s26 + $0x10] sm:$0xff] }
  0x37   : > { %380 = vst [vmem:[%s346_s25] sm:$0xff] %v379_v0  ;;  %382 = vst [vmem:[%s346_s25 + $0x8] sm:$0xff] %v381_v1 }
  0x38 PF: > { %s5644_s29 = sand.u32 1, %s5427_s16   ;;  %s4565_s18 = sshll.u32 %s5447_s21, 14 }
  0x39   : > { %s4231_s22 = sshll.u32 %s5644_s29, 10  ;;  %s6387_s6 = sld [smem:[#allocation29_spill]] }
  0x3a   : > { %s425_s14 = scalar_lea.vmem [#allocation5], %s4231_s22  ;;  %s422_s26 = scalar_lea.sflag [#allocation6], %s5644_s29 }
  0x3b   : > { %s432_s28 = sshll.u32 %s425_s14, 4  ;;  %s5457_s25 = smov [#allocation5]   ;;  %s433_s28 = int_to_ptr.vmem [resolvable:$true] %s432_s28 }
  0x3c   : > { %s5291_s24 = scalar_lea.vmem %s433_s28, 16384  ;;  %s5295_s0 = sshll.u32 %s5457_s25, 4  ;;  %s5296_s0 = int_to_ptr.vmem [resolvable:$false] %s5295_s0 }
  0x3d   : > { %p5292_p1 = scmp.ne.s32.totalorder %s433_s28, %s5291_s24  ;;  %s5297_s16 = scalar_lea.vmem %s5296_s0, 32768 }
  0x3e   : > { %p5298_p8 = scmp.lt.s32.totalorder %s433_s28, %s5296_s0  ;;  %p5299_p9 = scmp.lt.s32.totalorder %s5297_s16, %s5291_s24 }
  0x3f   : > { %s431_s27 = scalar_lea.hbm %s6387_s6, %s4565_s18  ;;  %p5293_p3 = pnand %p5292_p1, %p5609_p7 }
  0x40   : > { %p5300_p10 = por %p5299_p9, %p5298_p8 }
  0x41   : > { %p5294_p6 = pneg %p5293_p3 }
  0x43   : > { %p5301_p11 = pnand %p5300_p10, %p5294_p6 }
  0x45   : > { %5304 = shalt.err (!%p5301_p11)
}
  0x46   : > { %s5458_s12 = smov 1024   ;;  %s5459_s10 = smov 64  }
  0x47   : > { %4980 = dma.hbm_to_vmem [thread:$0]  (%p5609_p7), %s431_s27, 16384, %s433_s28, %s422_s26, %s5458_s12, %s5458_s12, %s5459_s10  }
  0x48   : > { %s452_s21 = scalar_lea.hbm %s6347_s7, %s4565_s18  ;;  %s446_s11 = scalar_lea.vmem [#allocation8], %s4231_s22 }
  0x49   : > { %s453_s25 = sshll.u32 %s446_s11, 4  ;;  %s443_s13 = scalar_lea.sflag [#allocation9], %s5644_s29  ;;  %s454_s25 = int_to_ptr.vmem [resolvable:$true] %s453_s25 }
  0x4a   : > { %s5317_s0 = scalar_lea.vmem %s454_s25, 16384  ;;  %s5460_s16 = smov [#allocation8]  }
  0x4b   : > { %p5318_p0 = scmp.ne.s32.totalorder %s454_s25, %s5317_s0  ;;  %s5321_s24 = sshll.u32 %s5460_s16, 4  ;;  %s5322_s24 = int_to_ptr.vmem [resolvable:$false] %s5321_s24 }
  0x4c   : > { %s5323_s1 = scalar_lea.vmem %s5322_s24, 32768  ;;  %p5324_p1 = scmp.lt.s32.totalorder %s454_s25, %s5322_s24 }
  0x4d   : > { %p5319_p2 = pnand %p5318_p0, %p5609_p7  ;;  %p5325_p3 = scmp.lt.s32.totalorder %s5323_s1, %s5317_s0 }
  0x4f   : > { %p5320_p5 = pneg %p5319_p2  ;;  %p5326_p6 = por %p5325_p3, %p5324_p1 }
  0x51   : > { %p5327_p8 = pnand %p5326_p6, %p5320_p5 }
  0x53   : > { %5330 = shalt.err (!%p5327_p8)
}
  0x54   : > { %s5461_s6 = smov 4  }
  0x55   : > { %4981 = dma.hbm_to_vmem [thread:$0]  (%p5609_p7), %s452_s21, 16384, %s454_s25, %s443_s13, %s5459_s10, %s5459_s10, %s5461_s6  }
  0x56 PF: > { %p4237_p9 = scmp.ge.s32.totalorder %s5455_s23, 1  ;;  %p476_p10 = scmp.lt.s32.totalorder %s5455_s23, 5 }
  0x58   : > { %p477_p11 = pnand %p4237_p9, %p476_p10 }
  0x59   : > { %s6363_s18 = sand.u32 (!%p477_p11), 1, %s5431_s17   ;;  %s489_s1 = sand.u32 (!%p477_p11), 1, %s5423_s15  }
  0x5a   : > { %480 = sbr.rel (%p477_p11) target bundleno = 1973 (0x7b5), region = 94  ;;  %s4238_s22 = sshll.u32 (!%p477_p11), %s6363_s18, 4 }
  0x5b   : > { %s4239_s11 = sshll.u32 (!%p477_p11), %s489_s1, 10  ;;  %s485_s29 = scalar_lea.vmem (!%p477_p11), [#allocation4], %s4238_s22 }
  0x5c   : > { %s490_s27 = scalar_lea.sflag (!%p477_p11), [#allocation6], %s489_s1  ;;  %s5670_s20 = scalar_lea.vmem (!%p477_p11), [#allocation5], %s4239_s11 }
  0x5f   : > { %5402 = dma.done.wait (%p5618_p12), %s490_s27, 16384  }
  0x60   : > { %5404 = vsyncadd (%p5618_p12), %s490_s27, 4294950912  ;;  %s499_s13 = scalar_lea.sflag [#allocation9], %s489_s1  ;;  %s5676_s21 = scalar_lea.vmem [#allocation8], %s4239_s11 }
  0x61   : > { %5406 = dma.done.wait (%p5618_p12), %s499_s13, 16384  }
  0x62   : > { %5408 = vsyncadd (%p5618_p12), %s499_s13, 4294950912  ;;  %p577_p7 = scmp.lt.s32.totalorder %s5439_s19, 1  ;;  %s6388_s2 = sld [smem:[#allocation28_spill]] }
  0x63   : > { %s5714_s16 = scalar_lea.vmem [#allocation10], %s4238_s22  ;;  %p4253_p12 = scmp.ne.s32.totalorder %s5439_s19, 0 }
  0x64   : > { %s578_s28 = scalar_select %p577_p7, %s5439_s19, 1 }
  0x65   : > { %610 = sbr.rel (%p4253_p12) target bundleno = 108 (0x6c), region = 110 }
  0x66   : > { %s4567_s26 = sshll.u32 %s578_s28, 6  ;;  %s4571_s12 = sshll.u32 %s578_s28, 4 }
  0x67   : > { %s5692_s24 = scalar_lea.vmem %s6343_s3, %s4567_s26  ;;  %s5697_s30 = scalar_lea.vmem %s6344_s4, %s4567_s26 }
  0x68   : > { %s5687_s25 = scalar_lea.vmem %s6388_s2, %s4567_s26  ;;  %s5702_s13 = scalar_lea.vmem %s6345_s5, %s4567_s26 }
  0x69   : > { %s5707_s10 = scalar_lea.vmem %s6348_s8, %s4571_s12  ;;  %s5712_s0 = scalar_lea.vmem %s6349_s9, %s4571_s12 }
  0x6a   : > { %v611_v2 = vld [vmem:[%s485_s29] sm:$0xff]  ;;  %v612_v3 = vld [vmem:[%s485_s29 + $0x8] sm:$0xff] }
  0x6b   : > { %613 = vst [vmem:[#allocation2] sm:$0xff] %v611_v2  ;;  %614 = vst [vmem:[#allocation2 + $0x8] sm:$0xff] %v612_v3 }
  0x6c PF: > { %v5088_v4 = vld [vmem:[%s5687_s25 + $0x38] sm:$0xff]   ;;  %v5462_v5 = vmov 0.0   ;;  %v5090_v7 = vld [vmem:[%s5687_s25 + $0x30] sm:$0xff]   ;;  %vm5463_vm0 = vmmov 0   ;;  %v5092_v9 = vld [vmem:[%s5687_s25 + $0x28] sm:$0xff]   ;;  %s6389_s22 = sld [smem:[#allocation27_spill]] }
  0x6d   : > { %4820 = vmatprep.subr.bf16.mxu0 %v5462_v5  ;;  %4840 = vmatprep.subr.bf16.mxu1 %v5462_v5  ;;  %v5089_v6 = vld [vmem:[%s5692_s24 + $0x38] sm:$0xff]   ;;  %v5091_v8 = vld [vmem:[%s5692_s24 + $0x30] sm:$0xff]   ;;  %v5093_v10 = vld [vmem:[%s5692_s24 + $0x28] sm:$0xff]   ;;  %p4560_p0 = scmp.ne.s32.totalorder %s5439_s19, 1 }
  0x6e   : > { %4821 = vmatpush3.bf16.msra.mxu0 %v5088_v4  ;;  %4836 = vmatprep.mubr.msk.bf16.mxu0 %vm5463_vm0, %v5462_v5  ;;  %v5094_v11 = vld [vmem:[%s5687_s25 + $0x20] sm:$0xff]   ;;  %v5096_v13 = vld [vmem:[%s5687_s25 + $0x18] sm:$0xff]   ;;  %v5098_v15 = vld [vmem:[%s5687_s25 + $0x10] sm:$0xff]  }
  0x6f   : > { %4841 = vmatpush3.bf16.msra.mxu1 %v5089_v6  ;;  %4822 = vmatprep.subr.bf16.mxu0 %v5462_v5  ;;  %v5095_v12 = vld [vmem:[%s5692_s24 + $0x20] sm:$0xff]   ;;  %v5097_v14 = vld [vmem:[%s5692_s24 + $0x18] sm:$0xff]   ;;  %v5099_v16 = vld [vmem:[%s5692_s24 + $0x10] sm:$0xff]  }
  0x70   : > { %4842 = vmatprep.subr.bf16.mxu1 %v5462_v5  ;;  %4856 = vmatprep.mubr.msk.bf16.mxu1 %vm5463_vm0, %v5462_v5  ;;  %v5100_v17 = vld [vmem:[%s5687_s25 + $0x8] sm:$0xff]   ;;  %v5102_v19 = vld [vmem:[%s5687_s25] sm:$0xff]   ;;  %v5104_v24 = vld [vmem:[%s5697_s30 + $0x38] sm:$0xff]  }
  0x71   : > { %v5101_v18 = vld [vmem:[%s5692_s24 + $0x8] sm:$0xff]   ;;  %v5103_v22 = vld [vmem:[%s5692_s24] sm:$0xff]   ;;  %v5105_v26 = vld [vmem:[%s5697_s30 + $0x30] sm:$0xff]  }
  0x72   : > { %4823 = vmatpush3.bf16.msra.mxu0 %v5090_v7  ;;  %v615_v20 = vld [vmem:[#allocation2] sm:$0xff]  ;;  %v616_v21 = vld [vmem:[#allocation2 + $0x8] sm:$0xff]  ;;  %s6390_s29 = smov %s6389_s22  ;;  %v5758_v25 = vld [vmem:[%s6389_s22 + $0x38] sm:$0xff]  }
  0x73   : > { %4843 = vmatpush3.bf16.msra.mxu1 %v5091_v8  ;;  %4824 = vmatprep.subr.bf16.mxu0 %v5462_v5  ;;  %v617_v23 = vpack.c.bf16 %v616_v21, %v615_v20  ;;  %v5765_v27 = vld [vmem:[%s6390_s29 + $0x30] sm:$0xff]   ;;  %v5106_v28 = vld [vmem:[%s5697_s30 + $0x28] sm:$0xff]   ;;  %v5107_v30 = vld [vmem:[%s5697_s30 + $0x20] sm:$0xff]  }
  0x74   : > { %4844 = vmatprep.subr.bf16.mxu1 %v5462_v5  ;;  %v5778_v29 = vld [vmem:[%s6390_s29 + $0x28] sm:$0xff]   ;;  %v5787_v31 = vld [vmem:[%s6390_s29 + $0x20] sm:$0xff]   ;;  %v5108_v32 = vld [vmem:[%s5697_s30 + $0x18] sm:$0xff]  }
  0x75   : > { %v5796_v33 = vld [vmem:[%s6390_s29 + $0x18] sm:$0xff]   ;;  %v5109_v34 = vld [vmem:[%s5697_s30 + $0x10] sm:$0xff]   ;;  %v5110_v36 = vld [vmem:[%s5697_s30 + $0x8] sm:$0xff]  }
  0x76   : > { %4825 = vmatpush3.bf16.msra.mxu0 %v5092_v9  ;;  %v5805_v35 = vld [vmem:[%s6390_s29 + $0x10] sm:$0xff]   ;;  %v5814_v37 = vld [vmem:[%s6390_s29 + $0x8] sm:$0xff]   ;;  %v5111_v38 = vld [vmem:[%s5697_s30] sm:$0xff]  }
  0x77   : > { %4845 = vmatpush3.bf16.msra.mxu1 %v5093_v10  ;;  %4826 = vmatprep.subr.bf16.mxu0 %v5462_v5  ;;  %v5843_v39 = vld [vmem:[%s6390_s29] sm:$0xff]   ;;  %v5120_v2 = vld [vmem:[%s5702_s13 + $0x38] sm:$0xff]   ;;  %v5121_v3 = vld [vmem:[%s5702_s13 + $0x30] sm:$0xff]  }
  0x78   : > { %4846 = vmatprep.subr.bf16.mxu1 %v5462_v5  ;;  %v4254_v40 = vld [vmem:[%s5707_s10] ss:$0 sm:$0xff]  ;;  %v4263_v41 = vld [vmem:[%s5707_s10 + $0x1] ss:$0 sm:$0xff]  ;;  %v5122_v4 = vld [vmem:[%s5702_s13 + $0x28] sm:$0xff]  }
  0x79   : > { %v5123_v6 = vld [vmem:[%s5702_s13 + $0x20] sm:$0xff]   ;;  %v5124_v7 = vld [vmem:[%s5702_s13 + $0x18] sm:$0xff]   ;;  %v5125_v8 = vld [vmem:[%s5702_s13 + $0x10] sm:$0xff]  }
  0x7a   : > { %4827 = vmatpush3.bf16.msra.mxu0 %v5094_v11  ;;  %v5126_v9 = vld [vmem:[%s5702_s13 + $0x8] sm:$0xff]   ;;  %v5127_v10 = vld [vmem:[%s5702_s13] sm:$0xff]  }
  0x7b   : > { %4847 = vmatpush3.bf16.msra.mxu1 %v5095_v12  ;;  %4828 = vmatprep.subr.bf16.mxu0 %v5462_v5 }
  0x7c   : > { %4848 = vmatprep.subr.bf16.mxu1 %v5462_v5 }
  0x7e   : > { %4829 = vmatpush3.bf16.msra.mxu0 %v5096_v13 }
  0x7f   : > { %4849 = vmatpush3.bf16.msra.mxu1 %v5097_v14  ;;  %4830 = vmatprep.subr.bf16.mxu0 %v5462_v5 }
  0x80   : > { %4850 = vmatprep.subr.bf16.mxu1 %v5462_v5 }
  0x82   : > { %4831 = vmatpush3.bf16.msra.mxu0 %v5098_v15 }
  0x83   : > { %4851 = vmatpush3.bf16.msra.mxu1 %v5099_v16  ;;  %4832 = vmatprep.subr.bf16.mxu0 %v5462_v5 }
  0x84   : > { %4852 = vmatprep.subr.bf16.mxu1 %v5462_v5 }
  0x86   : > { %4833 = vmatpush3.bf16.msra.mxu0 %v5100_v17 }
  0x87   : > { %4853 = vmatpush3.bf16.msra.mxu1 %v5101_v18  ;;  %4834 = vmatprep.subr.bf16.mxu0 %v5462_v5 }
  0x88   : > { %4854 = vmatprep.subr.bf16.mxu1 %v5462_v5 }
  0x8a   : > { %4835 = vmatpush3.bf16.msra.mxu0 %v5102_v19 }
  0x8b   : > { %4855 = vmatpush3.bf16.msra.mxu1 %v5103_v22  ;;  %4860 = vmatprep.subr.bf16.mxu0 %v5462_v5 }
  0x8c   : > { %4880 = vmatprep.subr.bf16.mxu1 %v5462_v5 }
  0x8d   : > { %4837 = vmatmul.mubr.bf16.vlgmr.msra.gmra.mxu0 %v617_v23 }
  0x8e   : > { %4857 = vmatmul.mubr.bf16.vlgmr.msra.gmra.mxu1 %v617_v23  ;;  %4861 = vmatpush3.bf16.msra.mxu0 %v5104_v24  ;;  %v4272_v24 = vld [vmem:[%s5707_s10 + $0x2] ss:$0 sm:$0xff] }
  0x8f   : > { %4862 = vmatprep.subr.bf16.mxu0 %v5462_v5  ;;  %4876 = vmatprep.mubr.msk.bf16.mxu0 %vm5463_vm0, %v5462_v5 }
  0x90   : > { %4881 = vmatpush3.bf16.msra.mxu1 %v5758_v25  ;;  %4896 = vmatprep.mubr.msk.bf16.mxu1 %vm5463_vm0, %v5462_v5 }
  0x91   : > { %4882 = vmatprep.subr.bf16.mxu1 %v5462_v5 }
  0x92   : > { %4863 = vmatpush3.bf16.msra.mxu0 %v5105_v26 }
  0x93   : > { %4864 = vmatprep.subr.bf16.mxu0 %v5462_v5 }
  0x94   : > { %4883 = vmatpush3.bf16.msra.mxu1 %v5765_v27 }
  0x95   : > { %4884 = vmatprep.subr.bf16.mxu1 %v5462_v5 }
  0x96   : > { %4865 = vmatpush3.bf16.msra.mxu0 %v5106_v28 }
  0x97   : > { %4866 = vmatprep.subr.bf16.mxu0 %v5462_v5 }
  0x98   : > { %4885 = vmatpush3.bf16.msra.mxu1 %v5778_v29 }
  0x99   : > { %4886 = vmatprep.subr.bf16.mxu1 %v5462_v5 }
  0x9a   : > { %4867 = vmatpush3.bf16.msra.mxu0 %v5107_v30 }
  0x9b   : > { %4868 = vmatprep.subr.bf16.mxu0 %v5462_v5 }
  0x9c   : > { %4887 = vmatpush3.bf16.msra.mxu1 %v5787_v31 }
  0x9d   : > { %4888 = vmatprep.subr.bf16.mxu1 %v5462_v5 }
  0x9e   : > { %4869 = vmatpush3.bf16.msra.mxu0 %v5108_v32 }
  0x9f   : > { %4870 = vmatprep.subr.bf16.mxu0 %v5462_v5 }
  0xa0   : > { %4889 = vmatpush3.bf16.msra.mxu1 %v5796_v33 }
  0xa1   : > { %4890 = vmatprep.subr.bf16.mxu1 %v5462_v5 }
  0xa2   : > { %4871 = vmatpush3.bf16.msra.mxu0 %v5109_v34 }
  0xa3   : > { %4872 = vmatprep.subr.bf16.mxu0 %v5462_v5 }
  0xa4   : > { %4891 = vmatpush3.bf16.msra.mxu1 %v5805_v35 }
  0xa5   : > { %4892 = vmatprep.subr.bf16.mxu1 %v5462_v5 }
  0xa6   : > { %4873 = vmatpush3.bf16.msra.mxu0 %v5110_v36 }
  0xa7   : > { %4874 = vmatprep.subr.bf16.mxu0 %v5462_v5 }
  0xa8   : > { %4893 = vmatpush3.bf16.msra.mxu1 %v5814_v37 }
  0xa9   : > { %4894 = vmatprep.subr.bf16.mxu1 %v5462_v5 }
  0xaa   : > { %4875 = vmatpush3.bf16.msra.mxu0 %v5111_v38 }
  0xab   : > { %4900 = vmatprep.subr.bf16.mxu0 %v5462_v5 }
  0xac   : > { %4895 = vmatpush3.bf16.msra.mxu1 %v5843_v39 }
  0xad   : > { %4877 = vmatmul.mubr.bf16.vlgmr.msra.gmra.mxu0 %v617_v23  ;;  %4920 = vmatprep.subr.bf16.mxu1 %v5462_v5 }
  0xae   : > { %4901 = vmatpush3.bf16.msra.mxu0 %v5758_v25  ;;  %4916 = vmatprep.mubr.msk.bf16.mxu0 %vm5463_vm0, %v5462_v5 }
  0xaf   : > { %4902 = vmatprep.subr.bf16.mxu0 %v5462_v5 }
  0xb2   : > { %4903 = vmatpush3.bf16.msra.mxu0 %v5765_v27 }
  0xb3   : > { %4904 = vmatprep.subr.bf16.mxu0 %v5462_v5 }
  0xb6   : > { %4905 = vmatpush3.bf16.msra.mxu0 %v5778_v29 }
  0xb7   : > { %4906 = vmatprep.subr.bf16.mxu0 %v5462_v5 }
  0xba   : > { %4907 = vmatpush3.bf16.msra.mxu0 %v5787_v31 }
  0xbb   : > { %4908 = vmatprep.subr.bf16.mxu0 %v5462_v5 }
  0xbe   : > { %4909 = vmatpush3.bf16.msra.mxu0 %v5796_v33 }
  0xbf   : > { %4910 = vmatprep.subr.bf16.mxu0 %v5462_v5 }
  0xc2   : > { %4911 = vmatpush3.bf16.msra.mxu0 %v5805_v35 }
  0xc3   : > { %4912 = vmatprep.subr.bf16.mxu0 %v5462_v5 }
  0xc6   : > { %4913 = vmatpush3.bf16.msra.mxu0 %v5814_v37 }
  0xc7   : > { %4914 = vmatprep.subr.bf16.mxu0 %v5462_v5 }
  0xca   : > { %4915 = vmatpush3.bf16.msra.mxu0 %v5843_v39 }
  0xcb   : > { %4940 = vmatprep.subr.bf16.mxu0 %v5462_v5 }
 0x14d   : > { %v721_v42 = vpop.f32.mrf.mxu0 }
 0x14e   : > { %v722_v43 = vadd.f32 %v4254_v40, %v721_v42  ;;  %v831_v44 = vpop.f32.mrf.mxu1 }
 0x14f   : > { %v832_v45 = vadd.f32 %v4263_v41, %v831_v44  ;;  %v4838_v46 = vpop.f32.mrf.mxu0 }
 0x150   : > { %v4858_v47 = vpop.f32.mrf.mxu1 }
 0x151   : > { %v964_v48 = vmul.f32 %v832_v45, %v722_v43  ;;  %v724_v49 = vpop.f32.mrf.mxu0 }
 0x152   : > { %v834_v50 = vpop.f32.mrf.mxu1  ;;  %v725_v57 = vadd.f32 %v4254_v40, %v724_v49 }
 0x153   : > { %v965_v51 = vpack.c.bf16 %v964_v48, %v964_v48  ;;  %v835_v52 = vadd.f32 %v4263_v41, %v834_v50  ;;  %v4839_v53 = vpop.f32.mrf.mxu0 }
 0x154   : > { %v4859_v54 = vpop.f32.mrf.mxu1  ;;  %v1111_v59 = vmul.f32 %v832_v45, %v725_v57 }
 0x155   : > { %v1054_v55 = vmul.f32 %v835_v52, %v722_v43  ;;  %4897 = vmatmul.mubr.bf16.vlgmr.msra.gmra.mxu1 %v965_v51  ;;  %v1153_v63 = vmul.f32 %v835_v52, %v725_v57 }
 0x156   : > { %4921 = vmatpush3.bf16.msra.mxu1 %v5758_v25  ;;  %4936 = vmatprep.mubr.msk.bf16.mxu1 %vm5463_vm0, %v5462_v5  ;;  %v1112_v62 = vpack.c.bf16 %v1111_v59, %v1111_v59 }
 0x157   : > { %v1055_v56 = vpack.c.bf16 %v1054_v55, %v1054_v55  ;;  %4922 = vmatprep.subr.bf16.mxu1 %v5462_v5  ;;  %v1154_v1 = vpack.c.bf16 %v1153_v63, %v1153_v63 }
 0x159   : > { %4917 = vmatmul.mubr.bf16.vlgmr.msra.gmra.mxu0 %v1055_v56 }
 0x15a   : > { %4923 = vmatpush3.bf16.msra.mxu1 %v5765_v27  ;;  %4941 = vmatpush3.bf16.msra.mxu0 %v5758_v25 }
 0x15b   : > { %4924 = vmatprep.subr.bf16.mxu1 %v5462_v5  ;;  %4942 = vmatprep.subr.bf16.mxu0 %v5462_v5 }
 0x15c   : > { %4956 = vmatprep.mubr.msk.bf16.mxu0 %vm5463_vm0, %v5462_v5 }
 0x15e   : > { %4925 = vmatpush3.bf16.msra.mxu1 %v5778_v29  ;;  %4943 = vmatpush3.bf16.msra.mxu0 %v5765_v27 }
 0x15f   : > { %4926 = vmatprep.subr.bf16.mxu1 %v5462_v5  ;;  %4944 = vmatprep.subr.bf16.mxu0 %v5462_v5 }
 0x162   : > { %4927 = vmatpush3.bf16.msra.mxu1 %v5787_v31  ;;  %4945 = vmatpush3.bf16.msra.mxu0 %v5778_v29 }
 0x163   : > { %4928 = vmatprep.subr.bf16.mxu1 %v5462_v5  ;;  %4946 = vmatprep.subr.bf16.mxu0 %v5462_v5 }
 0x166   : > { %4929 = vmatpush3.bf16.msra.mxu1 %v5796_v33  ;;  %4947 = vmatpush3.bf16.msra.mxu0 %v5787_v31 }
 0x167   : > { %4930 = vmatprep.subr.bf16.mxu1 %v5462_v5  ;;  %4948 = vmatprep.subr.bf16.mxu0 %v5462_v5 }
 0x16a   : > { %4931 = vmatpush3.bf16.msra.mxu1 %v5805_v35  ;;  %4949 = vmatpush3.bf16.msra.mxu0 %v5796_v33 }
 0x16b   : > { %4932 = vmatprep.subr.bf16.mxu1 %v5462_v5  ;;  %4950 = vmatprep.subr.bf16.mxu0 %v5462_v5 }
 0x16d   : > { %v941_v58 = vpop.f32.mrf.mxu0 }
 0x16e   : > { %4933 = vmatpush3.bf16.msra.mxu1 %v5814_v37  ;;  %4951 = vmatpush3.bf16.msra.mxu0 %v5805_v35  ;;  %v942_v25 = vadd.f32 %v4272_v24, %v941_v58  ;;  %v4289_v58 = vld [vmem:[%s5707_s10 + $0x3] ss:$0 sm:$0xff] }
 0x16f   : > { %4934 = vmatprep.subr.bf16.mxu1 %v5462_v5  ;;  %4952 = vmatprep.subr.bf16.mxu0 %v5462_v5  ;;  %v4878_v60 = vpop.f32.mrf.mxu0 }
 0x171   : > { %v944_v61 = vpop.f32.mrf.mxu0 }
 0x172   : > { %4935 = vmatpush3.bf16.msra.mxu1 %v5843_v39  ;;  %4953 = vmatpush3.bf16.msra.mxu0 %v5814_v37  ;;  %v945_v26 = vadd.f32 %v4272_v24, %v944_v61  ;;  %v1465_v24 = vld [vmem:[%s5670_s20 + $0x308] sm:$0xff] }
 0x173   : > { %4954 = vmatprep.subr.bf16.mxu0 %v5462_v5  ;;  %v4879_v0 = vpop.f32.mrf.mxu0  ;;  %4960 = vmatprep.subr.bf16.mxu1 %v5462_v5 }
 0x175   : > { %4937 = vmatmul.mubr.bf16.vlgmr.msra.gmra.mxu1 %v1112_v62  ;;  %v5277_v62 = vld [vmem:[#allocation2] sm:$0xff] }
 0x176   : > { %4955 = vmatpush3.bf16.msra.mxu0 %v5843_v39  ;;  %4976 = vmatprep.mubr.msk.bf16.mxu1 %vm5463_vm0, %v5462_v5 }
 0x177   : > { %4961 = vmatpush3.bf16.msra.mxu1 %v5120_v2 }
 0x178   : > { %4962 = vmatprep.subr.bf16.mxu1 %v5462_v5 }
 0x179   : > { %4957 = vmatmul.mubr.bf16.vlgmr.msra.gmra.mxu0 %v1154_v1 }
 0x17b   : > { %4963 = vmatpush3.bf16.msra.mxu1 %v5121_v3  ;;  %v5278_v3 = vld [vmem:[#allocation2 + $0x8] sm:$0xff] }
 0x17c   : > { %4964 = vmatprep.subr.bf16.mxu1 %v5462_v5 }
 0x17f   : > { %4965 = vmatpush3.bf16.msra.mxu1 %v5122_v4 }
 0x180   : > { %4966 = vmatprep.subr.bf16.mxu1 %v5462_v5 }
 0x183   : > { %4967 = vmatpush3.bf16.msra.mxu1 %v5123_v6  ;;  %v1480_v6 = vld [vmem:[%s5670_s20 + $0x380] sm:$0xff] }
 0x184   : > { %4968 = vmatprep.subr.bf16.mxu1 %v5462_v5 }
 0x187   : > { %4969 = vmatpush3.bf16.msra.mxu1 %v5124_v7  ;;  %v1488_v7 = vld [vmem:[%s5670_s20 + $0x3c0] sm:$0xff] }
 0x188   : > { %4970 = vmatprep.subr.bf16.mxu1 %v5462_v5 }
 0x18b   : > { %4971 = vmatpush3.bf16.msra.mxu1 %v5125_v8  ;;  %v1481_v8 = vld [vmem:[%s5670_s20 + $0x388] sm:$0xff] }
 0x18c   : > { %4972 = vmatprep.subr.bf16.mxu1 %v5462_v5 }
 0x18f   : > { %4973 = vmatpush3.bf16.msra.mxu1 %v5126_v9  ;;  %v4413_v9 = vcombine.low %v1480_v6, %v1488_v7 }
 0x190   : > { %4974 = vmatprep.subr.bf16.mxu1 %v5462_v5 }
 0x193   : > { %4975 = vmatpush3.bf16.msra.mxu1 %v5127_v10  ;;  %v4414_v10 = vcombine.high %v1480_v6, %v1488_v7  ;;  %v1368_v6 = vld [vmem:[%s5670_s20] sm:$0xff] }
 0x194   : > { %v1376_v7 = vld [vmem:[%s5670_s20 + $0x40] sm:$0xff] }
 0x195   : > { %2220 = vmatprep.subr.bf16.mxu0 %v4414_v10  ;;  %v1377_v10 = vld [vmem:[%s5670_s20 + $0x48] sm:$0xff] }
 0x196   : > { %2221 = vmatpush1.bf16.msra.mxu0 %v4413_v9  ;;  %v4302_v9 = vcombine.high %v1368_v6, %v1376_v7 }
 0x215   : > { %v1048_v11 = vpop.f32.mrf.mxu1 }
 0x217   : > { %v4898_v12 = vpop.f32.mrf.mxu1 }
 0x219   : > { %v1051_v13 = vpop.f32.mrf.mxu1  ;;  %v1090_v14 = vpop.f32.mrf.mxu0 }
 0x21a   : > { %v1096_v15 = vmax.f32 %v1048_v11, %v1090_v14 }
 0x21b   : > { %v4899_v16 = vpop.f32.mrf.mxu1  ;;  %v4918_v17 = vpop.f32.mrf.mxu0 }
 0x21c   : > { %v1097_v18 = vsub.f32 %v1048_v11, %v1096_v15  ;;  %v1100_v19 = vsub.f32 %v1090_v14, %v1096_v15  ;;  %v1489_v11 = vld [vmem:[%s5670_s20 + $0x3c8] sm:$0xff] }
 0x21d   : > { %v1093_v20 = vpop.f32.mrf.mxu0  ;;  %v4415_v12 = vcombine.low %v1481_v8, %v1489_v11  ;;  %v4416_v13 = vcombine.high %v1481_v8, %v1489_v11  ;;  %v1369_v8 = vld [vmem:[%s5670_s20 + $0x8] sm:$0xff]  ;;  %v4301_v11 = vcombine.low %v1368_v6, %v1376_v7  ;;  %v1402_v6 = vld [vmem:[%s5670_s20 + $0x110] sm:$0xff] }
 0x21e   : > { %v1098_v21 = vmul.f32 1.442695, %v1097_v18  ;;  %v1101_v22 = vmul.f32 1.442695, %v1100_v19  ;;  %v1410_v7 = vld [vmem:[%s5670_s20 + $0x150] sm:$0xff] }
 0x21f   : > { %v4919_v23 = vpop.f32.mrf.mxu0  ;;  %2263 = vmatprep.subr.bf16.mxu1 %v4416_v13  ;;  %v4304_v13 = vcombine.high %v1369_v8, %v1377_v10 }
 0x220   : > { %5257 = vpow2.f32 %v1098_v21  ;;  %v1472_v23 = vld [vmem:[%s5670_s20 + $0x340] sm:$0xff] }
 0x221   : > { %5259 = vpow2.f32 %v1101_v22  ;;  %v1464_v22 = vld [vmem:[%s5670_s20 + $0x300] sm:$0xff] }
 0x22d   : > { %v5258_v5 = vpop.eup %5257 }
 0x22e   : > { %v5260_v27 = vpop.eup %5259  ;;  %v1104_v28 = vmul.f32 %v5258_v5, %v942_v25 }
 0x22f   : > { %v1103_v29 = vadd.f32 %v5260_v27, %v5258_v5  ;;  %v1105_v30 = vmul.f32 %v5260_v27, %v945_v26  ;;  %v1473_v5 = vld [vmem:[%s5670_s20 + $0x348] sm:$0xff] }
 0x230   : > { %v4399_v27 = vcombine.low %v1465_v24, %v1473_v5 }
 0x231   : > { %v1106_v31 = vadd.f32 %v1105_v30, %v1104_v28  ;;  %5261 = vrcp.f32 %v1103_v29  ;;  %v4400_v28 = vcombine.high %v1465_v24, %v1473_v5  ;;  %v1448_v29 = vld [vmem:[%s5670_s20 + $0x280] sm:$0xff]  ;;  %v5464_v24 = vmov 0  }
 0x232   : > { %v1456_v30 = vld [vmem:[%s5670_s20 + $0x2c0] sm:$0xff]  ;;  %2252 = vmatprep.mubr.bf16.mxu0 %v5464_v24 }
 0x235   : > { %v1147_v32 = vpop.f32.mrf.mxu1 }
 0x237   : > { %v4938_v33 = vpop.f32.mrf.mxu1 }
 0x238   : > { %v1457_v33 = vld [vmem:[%s5670_s20 + $0x2c8] sm:$0xff] }
 0x239   : > { %v1150_v34 = vpop.f32.mrf.mxu1  ;;  %v1189_v35 = vpop.f32.mrf.mxu0 }
 0x23a   : > { %v1195_v36 = vmax.f32 %v1147_v32, %v1189_v35  ;;  %v4381_v34 = vcombine.low %v1448_v29, %v1456_v30 }
 0x23b   : > { %v4939_v37 = vpop.f32.mrf.mxu1  ;;  %v4958_v38 = vpop.f32.mrf.mxu0 }
 0x23c   : > { %v1196_v39 = vsub.f32 %v1147_v32, %v1195_v36  ;;  %v1199_v40 = vsub.f32 %v1189_v35, %v1195_v36  ;;  %v4382_v32 = vcombine.high %v1448_v29, %v1456_v30  ;;  %v1432_v37 = vld [vmem:[%s5670_s20 + $0x200] sm:$0xff] }
 0x23d   : > { %v1192_v41 = vpop.f32.mrf.mxu0  ;;  %v1440_v38 = vld [vmem:[%s5670_s20 + $0x240] sm:$0xff] }
 0x23e   : > { %v5262_v42 = vpop.eup %5261  ;;  %v1197_v43 = vmul.f32 1.442695, %v1196_v39  ;;  %v1200_v44 = vmul.f32 1.442695, %v1199_v40  ;;  %v1433_v39 = vld [vmem:[%s5670_s20 + $0x208] sm:$0xff]  ;;  %v4366_v40 = vcombine.high %v1432_v37, %v1440_v38 }
 0x23f   : > { %v1108_v45 = vmul.f32 %v5262_v42, %v1106_v31  ;;  %v4959_v46 = vpop.f32.mrf.mxu0  ;;  %v1449_v31 = vld [vmem:[%s5670_s20 + $0x288] sm:$0xff]  ;;  %v4365_v42 = vcombine.low %v1432_v37, %v1440_v38  ;;  %v1466_v38 = vld [vmem:[%s5670_s20 + $0x310] sm:$0xff] }
 0x240   : > { %5263 = vpow2.f32 %v1197_v43  ;;  %v4383_v35 = vcombine.low %v1449_v31, %v1457_v33  ;;  %v4384_v36 = vcombine.high %v1449_v31, %v1457_v33  ;;  %v1441_v41 = vld [vmem:[%s5670_s20 + $0x248] sm:$0xff]  ;;  %v1424_v46 = vld [vmem:[%s5670_s20 + $0x1c0] sm:$0xff] }
 0x241   : > { %v1109_v47 = vpack.c.bf16 %v1108_v45, %v1108_v45  ;;  %5265 = vpow2.f32 %v1200_v44  ;;  %v4367_v43 = vcombine.low %v1433_v39, %v1441_v41  ;;  %v4368_v44 = vcombine.high %v1433_v39, %v1441_v41  ;;  %v1416_v45 = vld [vmem:[%s5670_s20 + $0x180] sm:$0xff]  ;;  %v1474_v39 = vld [vmem:[%s5670_s20 + $0x350] sm:$0xff]  ;;  %v1475_v41 = vld [vmem:[%s5670_s20 + $0x358] sm:$0xff] }
 0x243   : > { %1110 = vst [vmem:[#allocation3] sm:$0xf] %v1109_v47  ;;  %v1417_v47 = vld [vmem:[%s5670_s20 + $0x188] sm:$0xff] }
 0x24d   : > { %v5264_v48 = vpop.eup %5263 }
 0x24e   : > { %v5266_v49 = vpop.eup %5265  ;;  %v1203_v50 = vmul.f32 %v5264_v48, %v942_v25  ;;  %v4398_v25 = vcombine.high %v1464_v22, %v1472_v23 }
 0x24f   : > { %v1202_v51 = vadd.f32 %v5266_v49, %v5264_v48  ;;  %v1204_v52 = vmul.f32 %v5266_v49, %v945_v26  ;;  %v4397_v26 = vcombine.low %v1464_v22, %v1472_v23  ;;  %v4350_v48 = vcombine.high %v1416_v45, %v1424_v46  ;;  %v1425_v49 = vld [vmem:[%s5670_s20 + $0x1c8] sm:$0xff] }
 0x250   : > { %2222 = vmatprep.subr.bf16.mxu0 %v4398_v25 }
 0x251   : > { %v1205_v53 = vadd.f32 %v1204_v52, %v1203_v50  ;;  %5267 = vrcp.f32 %v1202_v51  ;;  %2223 = vmatpush1.bf16.msra.mxu0 %v4397_v26  ;;  %v4349_v50 = vcombine.low %v1416_v45, %v1424_v46  ;;  %v4351_v51 = vcombine.low %v1417_v47, %v1425_v49  ;;  %v1450_v46 = vld [vmem:[%s5670_s20 + $0x290] sm:$0xff] }
 0x252   : > { %2224 = vmatprep.subr.bf16.mxu0 %v4382_v32  ;;  %v4352_v52 = vcombine.high %v1417_v47, %v1425_v49  ;;  %v4299_v32 = vld [vmem:[%s5707_s10 + $0x5] ss:$0 sm:$0xff]  ;;  %v1451_v47 = vld [vmem:[%s5670_s20 + $0x298] sm:$0xff]  ;;  %v4401_v49 = vcombine.low %v1466_v38, %v1474_v39 }
 0x255   : > { %2225 = vmatpush1.bf16.msra.mxu0 %v4381_v34 }
 0x256   : > { %2226 = vmatprep.subr.bf16.mxu0 %v4366_v40  ;;  %v1467_v40 = vld [vmem:[%s5670_s20 + $0x318] sm:$0xff] }
 0x257   : > { %v4404_v45 = vcombine.high %v1467_v40, %v1475_v41 }
 0x259   : > { %2227 = vmatpush1.bf16.msra.mxu0 %v4365_v42 }
 0x25a   : > { %2228 = vmatprep.subr.bf16.mxu0 %v4350_v48  ;;  %v1459_v48 = vld [vmem:[%s5670_s20 + $0x2d8] sm:$0xff] }
 0x25d   : > { %2229 = vmatpush1.bf16.msra.mxu0 %v4349_v50  ;;  %v4403_v50 = vcombine.low %v1467_v40, %v1475_v41  ;;  %v1468_v40 = vld [vmem:[%s5670_s20 + $0x320] sm:$0xff] }
 0x25e   : > { %v5268_v54 = vpop.eup %5267  ;;  %v1476_v41 = vld [vmem:[%s5670_s20 + $0x360] sm:$0xff] }
 0x25f   : > { %v1207_v55 = vmul.f32 %v5268_v54, %v1205_v53  ;;  %v1400_v53 = vld [vmem:[%s5670_s20 + $0x100] sm:$0xff] }
 0x260   : > { %v1408_v54 = vld [vmem:[%s5670_s20 + $0x140] sm:$0xff] }
 0x261   : > { %v1208_v56 = vpack.c.bf16 %v1207_v55, %v1207_v55  ;;  %v1401_v55 = vld [vmem:[%s5670_s20 + $0x108] sm:$0xff] }
 0x263   : > { %1209 = vst [vmem:[#allocation3 + $0x4] sm:$0xf] %v1208_v56  ;;  %v4334_v56 = vcombine.high %v1400_v53, %v1408_v54 }
 0x265   : > { %2230 = vmatprep.subr.bf16.mxu0 %v4334_v56  ;;  %v1443_v56 = vld [vmem:[%s5670_s20 + $0x258] sm:$0xff] }
 0x26a   : > { %v5128_v57 = vld [vmem:[#allocation3] sm:$0xff]  }
 0x26b   : > { %4977 = vmatmul.mubr.bf16.vlgmr.msra.gmra.mxu1 %v5128_v57  ;;  %v1409_v57 = vld [vmem:[%s5670_s20 + $0x148] sm:$0xff] }
 0x26c   : > { %2264 = vmatpush1.bf16.msra.mxu1 %v4415_v12  ;;  %v4303_v12 = vcombine.low %v1369_v8, %v1377_v10  ;;  %2295 = vmatprep.mubr.bf16.mxu1 %v5464_v24  ;;  %v1403_v8 = vld [vmem:[%s5670_s20 + $0x118] sm:$0xff] }
 0x26d   : > { %2265 = vmatprep.subr.bf16.mxu1 %v4400_v28 }
 0x270   : > { %2266 = vmatpush1.bf16.msra.mxu1 %v4399_v27 }
 0x271   : > { %2267 = vmatprep.subr.bf16.mxu1 %v4384_v36  ;;  %v4300_v36 = vld [vmem:[%s5707_s10 + $0x6] ss:$0 sm:$0xff] }
 0x274   : > { %2268 = vmatpush1.bf16.msra.mxu1 %v4383_v35 }
 0x275   : > { %2269 = vmatprep.subr.bf16.mxu1 %v4368_v44  ;;  %v4402_v44 = vcombine.high %v1466_v38, %v1474_v39 }
 0x278   : > { %2270 = vmatpush1.bf16.msra.mxu1 %v4367_v43 }
 0x279   : > { %2271 = vmatprep.subr.bf16.mxu1 %v4352_v52  ;;  %v4388_v52 = vcombine.high %v1451_v47, %v1459_v48 }
 0x27c   : > { %2272 = vmatpush1.bf16.msra.mxu1 %v4351_v51 }
 0x32b   : > { %v1321_v59 = vpop.f32.mrf.mxu1 }
 0x32c   : > { %v1322_v60 = vadd.f32 %v4289_v58, %v1321_v59  ;;  %v4335_v59 = vcombine.low %v1401_v55, %v1409_v57 }
 0x32d   : > { %v4978_v61 = vpop.f32.mrf.mxu1 }
 0x32e   : > { %v1328_v63 = vadd.f32 %v5277_v62, %v1322_v60  ;;  %v4336_v60 = vcombine.high %v1401_v55, %v1409_v57  ;;  %v1384_v61 = vld [vmem:[%s5670_s20 + $0x80] sm:$0xff]  ;;  %v1435_v55 = vld [vmem:[%s5670_s20 + $0x218] sm:$0xff] }
 0x32f   : > { %v1324_v0 = vpop.f32.mrf.mxu1  ;;  %v1392_v62 = vld [vmem:[%s5670_s20 + $0xc0] sm:$0xff] }
 0x330   : > { %v1325_v1 = vadd.f32 %v4289_v58, %v1324_v0  ;;  %1332 = vadd.xlane.f32.xlu0 %v1328_v63  ;;  %v4333_v58 = vcombine.low %v1400_v53, %v1408_v54  ;;  %2273 = vmatprep.subr.bf16.mxu1 %v4336_v60  ;;  %v4318_v0 = vcombine.high %v1384_v61, %v1392_v62  ;;  %v1434_v53 = vld [vmem:[%s5670_s20 + $0x210] sm:$0xff] }
 0x331   : > { %v4979_v2 = vpop.f32.mrf.mxu1  ;;  %2274 = vmatpush1.bf16.msra.mxu1 %v4335_v59  ;;  %v1442_v54 = vld [vmem:[%s5670_s20 + $0x250] sm:$0xff]  ;;  %v4372_v60 = vcombine.high %v1435_v55, %v1443_v56 }
 0x332   : > { %v1329_v4 = vadd.f32 %v5278_v3, %v1325_v1  ;;  %2231 = vmatpush1.bf16.msra.mxu0 %v4333_v58  ;;  %v1393_v1 = vld [vmem:[%s5670_s20 + $0xc8] sm:$0xff]  ;;  %v4317_v2 = vcombine.low %v1384_v61, %v1392_v62  ;;  %v4387_v58 = vcombine.low %v1451_v47, %v1459_v48  ;;  %v4370_v59 = vcombine.high %v1434_v53, %v1442_v54  ;;  %v1418_v61 = vld [vmem:[%s5670_s20 + $0x190] sm:$0xff] }
 0x333   : > { %2232 = vmatprep.subr.bf16.mxu0 %v4318_v0  ;;  %v1426_v62 = vld [vmem:[%s5670_s20 + $0x1d0] sm:$0xff]  ;;  %v1427_v0 = vld [vmem:[%s5670_s20 + $0x1d8] sm:$0xff]  ;;  %v4406_v47 = vcombine.high %v1468_v40, %v1476_v41 }
 0x334   : > { %1334 = vadd.xlane.f32.xlu0 %v1329_v4  ;;  %v4353_v10 = vcombine.low %v1418_v61, %v1426_v62 }
 0x336   : > { %2233 = vmatpush1.bf16.msra.mxu0 %v4317_v2  ;;  %v4371_v2 = vcombine.low %v1435_v55, %v1443_v56 }
 0x337   : > { %2234 = vmatprep.subr.bf16.mxu0 %v4302_v9  ;;  %v1411_v9 = vld [vmem:[%s5670_s20 + $0x158] sm:$0xff] }
 0x33a   : > { %2235 = vmatpush1.bf16.msra.mxu0 %v4301_v11 }
 0x3b9   : > { %v1333_v14 = vpop.xlane.xlu0 %1332 }
 0x3ba   : > { %v1337_v15 = vmul.f32 0.0078125, %v1333_v14  ;;  %v1482_v14 = vld [vmem:[%s5670_s20 + $0x390] sm:$0xff] }
 0x3bc   : > { %v5909_v16 = vsub.f32 %v1328_v63, %v1337_v15  ;;  %v1385_v63 = vld [vmem:[%s5670_s20 + $0x88] sm:$0xff]  ;;  %v1490_v15 = vld [vmem:[%s5670_s20 + $0x3d0] sm:$0xff] }
 0x3bd   : > { %v1335_v17 = vpop.xlane.xlu0 %1334  ;;  %v4319_v3 = vcombine.low %v1385_v63, %v1393_v1 }
 0x3be   : > { %v1338_v18 = vmul.f32 0.0078125, %v1335_v17  ;;  %v1341_v19 = vmul.f32 %v5909_v16, %v5909_v16  ;;  %v1483_v17 = vld [vmem:[%s5670_s20 + $0x398] sm:$0xff] }
 0x3c0   : > { %v5913_v20 = vsub.f32 %v1329_v4, %v1338_v18  ;;  %1343 = vadd.xlane.f32.xlu1 %v1341_v19  ;;  %v4320_v4 = vcombine.high %v1385_v63, %v1393_v1  ;;  %v4418_v18 = vcombine.high %v1482_v14, %v1490_v15  ;;  %v1491_v19 = vld [vmem:[%s5670_s20 + $0x3d8] sm:$0xff]  ;;  %v4369_v1 = vcombine.low %v1434_v53, %v1442_v54 }
 0x3c1   : > { %v4419_v22 = vcombine.low %v1483_v17, %v1491_v19  ;;  %v4420_v23 = vcombine.high %v1483_v17, %v1491_v19  ;;  %v1419_v63 = vld [vmem:[%s5670_s20 + $0x198] sm:$0xff]  ;;  %v4337_v19 = vcombine.low %v1402_v6, %v1410_v7  ;;  %v4405_v53 = vcombine.low %v1468_v40, %v1476_v41 }
 0x3c2   : > { %v1342_v21 = vmul.f32 %v5913_v20, %v5913_v20  ;;  %2275 = vmatprep.subr.bf16.mxu1 %v4320_v4  ;;  %2306 = vmatprep.subr.bf16.mxu0 %v4418_v18  ;;  %v4356_v4 = vcombine.high %v1419_v63, %v1427_v0  ;;  %v4355_v11 = vcombine.low %v1419_v63, %v1427_v0  ;;  %v1387_v17 = vld [vmem:[%s5670_s20 + $0x98] sm:$0xff] }
 0x3c3   : > { %2276 = vmatpush1.bf16.msra.mxu1 %v4319_v3  ;;  %v4354_v3 = vcombine.high %v1418_v61, %v1426_v62  ;;  %v1395_v18 = vld [vmem:[%s5670_s20 + $0xd8] sm:$0xff] }
 0x3c4   : > { %1345 = vadd.xlane.f32.xlu1 %v1342_v21  ;;  %2277 = vmatprep.subr.bf16.mxu1 %v4304_v13  ;;  %v4417_v21 = vcombine.low %v1482_v14, %v1490_v15  ;;  %v4340_v13 = vcombine.high %v1403_v8, %v1411_v9  ;;  %v1386_v14 = vld [vmem:[%s5670_s20 + $0x90] sm:$0xff] }
 0x3c5   : > { %v1394_v15 = vld [vmem:[%s5670_s20 + $0xd0] sm:$0xff] }
 0x3c7   : > { %2278 = vmatpush1.bf16.msra.mxu1 %v4303_v12  ;;  %v4338_v12 = vcombine.high %v1402_v6, %v1410_v7 }
 0x3c8   : > { %2349 = vmatprep.subr.bf16.mxu1 %v4420_v23  ;;  %v4324_v23 = vcombine.high %v1387_v17, %v1395_v18 }
 0x449   : > { %v1344_v25 = vpop.xlane.xlu1 %1343 }
 0x44a   : > { %v1347_v5 = vmul.f32 0.0078125, %v1344_v25  ;;  %v1370_v25 = vld [vmem:[%s5670_s20 + $0x10] sm:$0xff] }
 0x44c   : > { %v1349_v26 = vadd.f32 1e-05, %v1347_v5  ;;  %v1378_v5 = vld [vmem:[%s5670_s20 + $0x50] sm:$0xff] }
 0x44d   : > { %v1346_v27 = vpop.xlane.xlu1 %1345 }
 0x44e   : > { %5269 = vrsqrt.f32 %v1349_v26  ;;  %v1348_v28 = vmul.f32 0.0078125, %v1346_v27  ;;  %v1371_v26 = vld [vmem:[%s5670_s20 + $0x18] sm:$0xff] }
 0x44f   : > { %v1379_v27 = vld [vmem:[%s5670_s20 + $0x58] sm:$0xff] }
 0x450   : > { %v1350_v29 = vadd.f32 1e-05, %v1348_v28  ;;  %v4321_v28 = vcombine.low %v1386_v14, %v1394_v15 }
 0x452   : > { %5271 = vrsqrt.f32 %v1350_v29  ;;  %v4323_v29 = vcombine.low %v1387_v17, %v1395_v18 }
 0x45b   : > { %v5270_v30 = vpop.eup %5269 }
 0x45c   : > { %v1353_v31 = vmul.f32 %v5270_v30, %v5909_v16  ;;  %v4306_v30 = vcombine.high %v1370_v25, %v1378_v5 }
 0x45e   : > { %v1359_v34 = vmul.f32 %v4299_v32, %v1353_v31  ;;  %v4308_v31 = vcombine.high %v1371_v26, %v1379_v27 }
 0x45f   : > { %v5272_v33 = vpop.eup %5271 }
 0x460   : > { %v1354_v35 = vmul.f32 %v5272_v33, %v5913_v20  ;;  %v5959_v42 = vadd.f32 %v4300_v36, %v1359_v34  ;;  %v1458_v20 = vld [vmem:[%s5670_s20 + $0x2d0] sm:$0xff]  ;;  %v1492_v33 = vld [vmem:[%s5670_s20 + $0x3e0] sm:$0xff]  ;;  %v1485_v34 = vld [vmem:[%s5670_s20 + $0x3a8] sm:$0xff] }
 0x461   : > { %v4386_v51 = vcombine.high %v1450_v46, %v1458_v20  ;;  %v4385_v57 = vcombine.low %v1450_v46, %v1458_v20 }
 0x462   : > { %v1360_v37 = vmul.f32 %v4299_v32, %v1354_v35  ;;  %v1484_v32 = vld [vmem:[%s5670_s20 + $0x3a0] sm:$0xff]  ;;  %v1493_v35 = vld [vmem:[%s5670_s20 + $0x3e8] sm:$0xff] }
 0x463   : > { %v4422_v38 = vcombine.high %v1484_v32, %v1492_v33  ;;  %v4424_v39 = vcombine.high %v1485_v34, %v1493_v35  ;;  %v4421_v46 = vcombine.low %v1484_v32, %v1492_v33  ;;  %v4423_v20 = vcombine.low %v1485_v34, %v1493_v35 }
 0x464   : > { %v5961_v43 = vadd.f32 %v4300_v36, %v1360_v37  ;;  %v4305_v36 = vcombine.low %v1370_v25, %v1378_v5  ;;  %v4307_v37 = vcombine.low %v1371_v26, %v1379_v27 }
 0x466   : > { %v5965_v16 = vpack.c.bf16 %v5961_v43, %v5959_v42 }
 0x468   : > { %2253 = vmatmul.mubr.bf16.vlgmr.msra.gmra.mxu0 %v5965_v16  ;;  %2296 = vmatmul.mubr.bf16.vlgmr.msra.gmra.mxu1 %v5965_v16 }
 0x469   : > { %2307 = vmatpush1.bf16.msra.mxu0 %v4417_v21  ;;  %2350 = vmatpush1.bf16.msra.mxu1 %v4419_v22  ;;  %v4339_v21 = vcombine.low %v1403_v8, %v1411_v9  ;;  %v4322_v22 = vcombine.high %v1386_v14, %v1394_v15 }
 0x46a   : > { %2308 = vmatprep.subr.bf16.mxu0 %v4402_v44  ;;  %2351 = vmatprep.subr.bf16.mxu1 %v4404_v45  ;;  %v1469_v44 = vld [vmem:[%s5670_s20 + $0x328] sm:$0xff] }
 0x46b   : > { %2338 = vmatprep.mubr.bf16.mxu0 %v5464_v24  ;;  %2381 = vmatprep.mubr.bf16.mxu1 %v5464_v24  ;;  %v1477_v45 = vld [vmem:[%s5670_s20 + $0x368] sm:$0xff] }
 0x46c   : > { %v4408_v48 = vcombine.high %v1469_v44, %v1477_v45  ;;  %v4407_v54 = vcombine.low %v1469_v44, %v1477_v45 }
 0x46d   : > { %2309 = vmatpush1.bf16.msra.mxu0 %v4401_v49  ;;  %2352 = vmatpush1.bf16.msra.mxu1 %v4403_v50  ;;  %v1452_v49 = vld [vmem:[%s5670_s20 + $0x2a0] sm:$0xff] }
 0x46e   : > { %2310 = vmatprep.subr.bf16.mxu0 %v4386_v51  ;;  %2353 = vmatprep.subr.bf16.mxu1 %v4388_v52  ;;  %v1460_v50 = vld [vmem:[%s5670_s20 + $0x2e0] sm:$0xff]  ;;  %v1453_v51 = vld [vmem:[%s5670_s20 + $0x2a8] sm:$0xff] }
 0x46f   : > { %v1461_v52 = vld [vmem:[%s5670_s20 + $0x2e8] sm:$0xff]  ;;  %v4390_v55 = vcombine.high %v1452_v49, %v1460_v50  ;;  %v4389_v61 = vcombine.low %v1452_v49, %v1460_v50 }
 0x470   : > { %v4392_v56 = vcombine.high %v1453_v51, %v1461_v52  ;;  %v4391_v62 = vcombine.low %v1453_v51, %v1461_v52 }
 0x471   : > { %2311 = vmatpush1.bf16.msra.mxu0 %v4385_v57  ;;  %2354 = vmatpush1.bf16.msra.mxu1 %v4387_v58  ;;  %v1436_v57 = vld [vmem:[%s5670_s20 + $0x220] sm:$0xff] }
 0x472   : > { %2312 = vmatprep.subr.bf16.mxu0 %v4370_v59  ;;  %2355 = vmatprep.subr.bf16.mxu1 %v4372_v60  ;;  %v1444_v58 = vld [vmem:[%s5670_s20 + $0x260] sm:$0xff]  ;;  %v1437_v59 = vld [vmem:[%s5670_s20 + $0x228] sm:$0xff] }
 0x473   : > { %v1445_v60 = vld [vmem:[%s5670_s20 + $0x268] sm:$0xff]  ;;  %v4374_v63 = vcombine.high %v1436_v57, %v1444_v58  ;;  %v4373_v6 = vcombine.low %v1436_v57, %v1444_v58 }
 0x474   : > { %v4376_v0 = vcombine.high %v1437_v59, %v1445_v60  ;;  %v4375_v7 = vcombine.low %v1437_v59, %v1445_v60 }
 0x475   : > { %2313 = vmatpush1.bf16.msra.mxu0 %v4369_v1  ;;  %2356 = vmatpush1.bf16.msra.mxu1 %v4371_v2  ;;  %v1420_v1 = vld [vmem:[%s5670_s20 + $0x1a0] sm:$0xff] }
 0x476   : > { %2314 = vmatprep.subr.bf16.mxu0 %v4354_v3  ;;  %2357 = vmatprep.subr.bf16.mxu1 %v4356_v4  ;;  %v1428_v2 = vld [vmem:[%s5670_s20 + $0x1e0] sm:$0xff]  ;;  %v1421_v3 = vld [vmem:[%s5670_s20 + $0x1a8] sm:$0xff] }
 0x477   : > { %v1429_v4 = vld [vmem:[%s5670_s20 + $0x1e8] sm:$0xff]  ;;  %v4358_v8 = vcombine.high %v1420_v1, %v1428_v2  ;;  %v4357_v14 = vcombine.low %v1420_v1, %v1428_v2 }
 0x478   : > { %v4360_v9 = vcombine.high %v1421_v3, %v1429_v4  ;;  %v4359_v15 = vcombine.low %v1421_v3, %v1429_v4 }
 0x479   : > { %2315 = vmatpush1.bf16.msra.mxu0 %v4353_v10  ;;  %2358 = vmatpush1.bf16.msra.mxu1 %v4355_v11  ;;  %v1404_v10 = vld [vmem:[%s5670_s20 + $0x120] sm:$0xff] }
 0x47a   : > { %2316 = vmatprep.subr.bf16.mxu0 %v4338_v12  ;;  %2359 = vmatprep.subr.bf16.mxu1 %v4340_v13  ;;  %v1412_v11 = vld [vmem:[%s5670_s20 + $0x160] sm:$0xff]  ;;  %v1405_v12 = vld [vmem:[%s5670_s20 + $0x128] sm:$0xff] }
 0x47b   : > { %v1413_v13 = vld [vmem:[%s5670_s20 + $0x168] sm:$0xff]  ;;  %v4342_v17 = vcombine.high %v1404_v10, %v1412_v11  ;;  %v4341_v25 = vcombine.low %v1404_v10, %v1412_v11 }
 0x47c   : > { %v4344_v18 = vcombine.high %v1405_v12, %v1413_v13  ;;  %v4343_v5 = vcombine.low %v1405_v12, %v1413_v13  ;;  %v1406_v13 = vld [vmem:[%s5670_s20 + $0x130] sm:$0xff] }
 0x47d   : > { %2317 = vmatpush1.bf16.msra.mxu0 %v4337_v19  ;;  %2360 = vmatpush1.bf16.msra.mxu1 %v4339_v21  ;;  %v1388_v19 = vld [vmem:[%s5670_s20 + $0xa0] sm:$0xff] }
 0x47e   : > { %2318 = vmatprep.subr.bf16.mxu0 %v4322_v22  ;;  %2361 = vmatprep.subr.bf16.mxu1 %v4324_v23  ;;  %v1396_v21 = vld [vmem:[%s5670_s20 + $0xe0] sm:$0xff]  ;;  %v1389_v22 = vld [vmem:[%s5670_s20 + $0xa8] sm:$0xff] }
 0x47f   : > { %v1397_v23 = vld [vmem:[%s5670_s20 + $0xe8] sm:$0xff]  ;;  %v4326_v26 = vcombine.high %v1388_v19, %v1396_v21  ;;  %v4325_v32 = vcombine.low %v1388_v19, %v1396_v21 }
 0x480   : > { %v4328_v27 = vcombine.high %v1389_v22, %v1397_v23  ;;  %v4327_v33 = vcombine.low %v1389_v22, %v1397_v23  ;;  %v1390_v23 = vld [vmem:[%s5670_s20 + $0xb0] sm:$0xff] }
 0x481   : > { %2319 = vmatpush1.bf16.msra.mxu0 %v4321_v28  ;;  %2362 = vmatpush1.bf16.msra.mxu1 %v4323_v29  ;;  %v1372_v28 = vld [vmem:[%s5670_s20 + $0x20] sm:$0xff] }
 0x482   : > { %2320 = vmatprep.subr.bf16.mxu0 %v4306_v30  ;;  %2363 = vmatprep.subr.bf16.mxu1 %v4308_v31  ;;  %v1380_v29 = vld [vmem:[%s5670_s20 + $0x60] sm:$0xff]  ;;  %v1373_v30 = vld [vmem:[%s5670_s20 + $0x28] sm:$0xff] }
 0x483   : > { %v1381_v31 = vld [vmem:[%s5670_s20 + $0x68] sm:$0xff]  ;;  %v4310_v34 = vcombine.high %v1372_v28, %v1380_v29  ;;  %v4309_v40 = vcombine.low %v1372_v28, %v1380_v29 }
 0x484   : > { %v4312_v35 = vcombine.high %v1373_v30, %v1381_v31  ;;  %v4311_v41 = vcombine.low %v1373_v30, %v1381_v31  ;;  %v1374_v31 = vld [vmem:[%s5670_s20 + $0x30] sm:$0xff] }
 0x485   : > { %2321 = vmatpush1.bf16.msra.mxu0 %v4305_v36  ;;  %2364 = vmatpush1.bf16.msra.mxu1 %v4307_v37  ;;  %v1486_v36 = vld [vmem:[%s5670_s20 + $0x3b0] sm:$0xff] }
 0x486   : > { %2392 = vmatprep.subr.bf16.mxu0 %v4422_v38  ;;  %2435 = vmatprep.subr.bf16.mxu1 %v4424_v39  ;;  %v1494_v37 = vld [vmem:[%s5670_s20 + $0x3f0] sm:$0xff]  ;;  %v1487_v38 = vld [vmem:[%s5670_s20 + $0x3b8] sm:$0xff] }
 0x487   : > { %v1495_v39 = vld [vmem:[%s5670_s20 + $0x3f8] sm:$0xff]  ;;  %v4426_v44 = vcombine.high %v1486_v36, %v1494_v37  ;;  %v4425_v49 = vcombine.low %v1486_v36, %v1494_v37 }
 0x488   : > { %2339 = vmatmul.mubr.bf16.vlgmr.msra.gmra.mxu0 %v5965_v16  ;;  %2382 = vmatmul.mubr.bf16.vlgmr.msra.gmra.mxu1 %v5965_v16  ;;  %v4428_v45 = vcombine.high %v1487_v38, %v1495_v39  ;;  %v4427_v50 = vcombine.low %v1487_v38, %v1495_v39 }
 0x489   : > { %2393 = vmatpush1.bf16.msra.mxu0 %v4421_v46  ;;  %2436 = vmatpush1.bf16.msra.mxu1 %v4423_v20  ;;  %v1470_v46 = vld [vmem:[%s5670_s20 + $0x330] sm:$0xff] }
 0x48a   : > { %2394 = vmatprep.subr.bf16.mxu0 %v4406_v47  ;;  %2437 = vmatprep.subr.bf16.mxu1 %v4408_v48  ;;  %v1478_v20 = vld [vmem:[%s5670_s20 + $0x370] sm:$0xff]  ;;  %v1471_v47 = vld [vmem:[%s5670_s20 + $0x338] sm:$0xff] }
 0x48b   : > { %2424 = vmatprep.mubr.bf16.mxu0 %v5464_v24  ;;  %2467 = vmatprep.mubr.bf16.mxu1 %v5464_v24  ;;  %v1479_v48 = vld [vmem:[%s5670_s20 + $0x378] sm:$0xff]  ;;  %v4410_v51 = vcombine.high %v1470_v46, %v1478_v20  ;;  %v4409_v57 = vcombine.low %v1470_v46, %v1478_v20  ;;  %v5133_v20 = vld [vmem:[%s5676_s21 + $0x70] sm:$0xff]  }
 0x48c   : > { %v4412_v52 = vcombine.high %v1471_v47, %v1479_v48  ;;  %v4411_v58 = vcombine.low %v1471_v47, %v1479_v48  ;;  %v5132_v46 = vld [vmem:[%s5676_s21 + $0xb8] sm:$0xff]   ;;  %v5134_v47 = vld [vmem:[%s5676_s21 + $0xf0] sm:$0xff]  }
 0x48d   : > { %2395 = vmatpush1.bf16.msra.mxu0 %v4405_v53  ;;  %2438 = vmatpush1.bf16.msra.mxu1 %v4407_v54  ;;  %v1454_v53 = vld [vmem:[%s5670_s20 + $0x2b0] sm:$0xff] }
 0x48e   : > { %2396 = vmatprep.subr.bf16.mxu0 %v4390_v55  ;;  %2439 = vmatprep.subr.bf16.mxu1 %v4392_v56  ;;  %v1462_v54 = vld [vmem:[%s5670_s20 + $0x2f0] sm:$0xff]  ;;  %v1455_v55 = vld [vmem:[%s5670_s20 + $0x2b8] sm:$0xff] }
 0x48f   : > { %v1463_v56 = vld [vmem:[%s5670_s20 + $0x2f8] sm:$0xff]  ;;  %v4394_v59 = vcombine.high %v1454_v53, %v1462_v54  ;;  %v4393_v1 = vcombine.low %v1454_v53, %v1462_v54  ;;  %v5135_v48 = vld [vmem:[%s5676_s21 + $0x30] sm:$0xff]   ;;  %v5140_v53 = vld [vmem:[%s5676_s21 + $0xa8] sm:$0xff]  }
 0x490   : > { %v4396_v60 = vcombine.high %v1455_v55, %v1463_v56  ;;  %v4395_v2 = vcombine.low %v1455_v55, %v1463_v56  ;;  %v5142_v54 = vld [vmem:[%s5676_s21 + $0xe0] sm:$0xff]  }
 0x491   : > { %2397 = vmatpush1.bf16.msra.mxu0 %v4389_v61  ;;  %2440 = vmatpush1.bf16.msra.mxu1 %v4391_v62  ;;  %v1438_v61 = vld [vmem:[%s5670_s20 + $0x230] sm:$0xff]  ;;  %v5143_v55 = vld [vmem:[%s5676_s21 + $0x20] sm:$0xff]  }
 0x492   : > { %2398 = vmatprep.subr.bf16.mxu0 %v4374_v63  ;;  %2441 = vmatprep.subr.bf16.mxu1 %v4376_v0  ;;  %v1446_v62 = vld [vmem:[%s5670_s20 + $0x270] sm:$0xff]  ;;  %v1439_v63 = vld [vmem:[%s5670_s20 + $0x238] sm:$0xff]  ;;  %v5144_v56 = vld [vmem:[%s5676_s21 + $0xa0] sm:$0xff]  }
 0x493   : > { %v1447_v0 = vld [vmem:[%s5670_s20 + $0x278] sm:$0xff]  ;;  %v4378_v3 = vcombine.high %v1438_v61, %v1446_v62  ;;  %v4377_v10 = vcombine.low %v1438_v61, %v1446_v62  ;;  %v5149_v61 = vld [vmem:[%s5676_s21 + $0x50] sm:$0xff]  }
 0x494   : > { %v4380_v4 = vcombine.high %v1439_v63, %v1447_v0  ;;  %v5150_v62 = vld [vmem:[%s5676_s21 + $0xd0] sm:$0xff]  }
 0x495   : > { %2399 = vmatpush1.bf16.msra.mxu0 %v4373_v6  ;;  %2442 = vmatpush1.bf16.msra.mxu1 %v4375_v7  ;;  %v1422_v6 = vld [vmem:[%s5670_s20 + $0x1b0] sm:$0xff] }
 0x496   : > { %2400 = vmatprep.subr.bf16.mxu0 %v4358_v8  ;;  %2443 = vmatprep.subr.bf16.mxu1 %v4360_v9  ;;  %v1430_v7 = vld [vmem:[%s5670_s20 + $0x1f0] sm:$0xff]  ;;  %v1423_v8 = vld [vmem:[%s5670_s20 + $0x1b8] sm:$0xff] }
 0x497   : > { %v1431_v9 = vld [vmem:[%s5670_s20 + $0x1f8] sm:$0xff]  ;;  %v4362_v11 = vcombine.high %v1422_v6, %v1430_v7 }
 0x498   : > { %v4364_v12 = vcombine.high %v1423_v8, %v1431_v9  ;;  %v4363_v19 = vcombine.low %v1423_v8, %v1431_v9  ;;  %v5159_v8 = vld [vmem:[%s5676_s21] sm:$0xff]  }
 0x499   : > { %2401 = vmatpush1.bf16.msra.mxu0 %v4357_v14  ;;  %2444 = vmatpush1.bf16.msra.mxu1 %v4359_v15  ;;  %v1414_v14 = vld [vmem:[%s5670_s20 + $0x170] sm:$0xff]  ;;  %v1407_v15 = vld [vmem:[%s5670_s20 + $0x138] sm:$0xff]  ;;  %v5160_v9 = vld [vmem:[%s5676_s21 + $0x80] sm:$0xff]  }
 0x49a   : > { %2402 = vmatprep.subr.bf16.mxu0 %v4342_v17  ;;  %2445 = vmatprep.subr.bf16.mxu1 %v4344_v18  ;;  %v1415_v17 = vld [vmem:[%s5670_s20 + $0x178] sm:$0xff]  ;;  %v4361_v18 = vcombine.low %v1422_v6, %v1430_v7  ;;  %v4346_v21 = vcombine.high %v1406_v13, %v1414_v14  ;;  %v5157_v6 = vld [vmem:[%s5676_s21 + $0x40] sm:$0xff]  }
 0x49b   : > { %v4348_v22 = vcombine.high %v1407_v15, %v1415_v17  ;;  %v4347_v28 = vcombine.low %v1407_v15, %v1415_v17  ;;  %v5158_v7 = vld [vmem:[%s5676_s21 + $0xc0] sm:$0xff]  }
 0x49d   : > { %2403 = vmatpush1.bf16.msra.mxu0 %v4341_v25  ;;  %2446 = vmatpush1.bf16.msra.mxu1 %v4343_v5  ;;  %v1398_v25 = vld [vmem:[%s5670_s20 + $0xf0] sm:$0xff]  ;;  %v1391_v5 = vld [vmem:[%s5670_s20 + $0xb8] sm:$0xff] }
 0x49e   : > { %2404 = vmatprep.subr.bf16.mxu0 %v4326_v26  ;;  %2447 = vmatprep.subr.bf16.mxu1 %v4328_v27  ;;  %v1399_v26 = vld [vmem:[%s5670_s20 + $0xf8] sm:$0xff]  ;;  %v4345_v27 = vcombine.low %v1406_v13, %v1414_v14  ;;  %v4330_v29 = vcombine.high %v1390_v23, %v1398_v25 }
 0x49f   : > { %v4332_v30 = vcombine.high %v1391_v5, %v1399_v26  ;;  %v4331_v36 = vcombine.low %v1391_v5, %v1399_v26 }
 0x4a1   : > { %2405 = vmatpush1.bf16.msra.mxu0 %v4325_v32  ;;  %2448 = vmatpush1.bf16.msra.mxu1 %v4327_v33  ;;  %v1382_v32 = vld [vmem:[%s5670_s20 + $0x70] sm:$0xff]  ;;  %v1375_v33 = vld [vmem:[%s5670_s20 + $0x38] sm:$0xff] }
 0x4a2   : > { %2406 = vmatprep.subr.bf16.mxu0 %v4310_v34  ;;  %2449 = vmatprep.subr.bf16.mxu1 %v4312_v35  ;;  %v1383_v34 = vld [vmem:[%s5670_s20 + $0x78] sm:$0xff]  ;;  %v4329_v35 = vcombine.low %v1390_v23, %v1398_v25  ;;  %v4314_v37 = vcombine.high %v1374_v31, %v1382_v32  ;;  %v4313_v39 = vcombine.low %v1374_v31, %v1382_v32 }
 0x4a3   : > { %v4316_v38 = vcombine.high %v1375_v33, %v1383_v34 }
 0x4a5   : > { %2407 = vmatpush1.bf16.msra.mxu0 %v4309_v40  ;;  %2450 = vmatpush1.bf16.msra.mxu1 %v4311_v41  ;;  %v4315_v40 = vcombine.low %v1375_v33, %v1383_v34  ;;  %v5129_v41 = vld [vmem:[%s5676_s21 + $0x78] sm:$0xff]  }
 0x4a6   : > { %2478 = vmatprep.subr.bf16.mxu0 %v4426_v44  ;;  %2521 = vmatprep.subr.bf16.mxu1 %v4428_v45  ;;  %v5130_v44 = vld [vmem:[%s5676_s21 + $0xf8] sm:$0xff]  }
 0x4a7   : > { %v5131_v45 = vld [vmem:[%s5676_s21 + $0x38] sm:$0xff]  }
 0x4a8   : > { %2425 = vmatmul.mubr.bf16.vlgmr.msra.gmra.mxu0 %v5965_v16  ;;  %2468 = vmatmul.mubr.bf16.vlgmr.msra.gmra.mxu1 %v5965_v16 }
 0x4a9   : > { %2479 = vmatpush1.bf16.msra.mxu0 %v4425_v49  ;;  %2522 = vmatpush1.bf16.msra.mxu1 %v4427_v50  ;;  %v5136_v49 = vld [vmem:[%s5676_s21 + $0xb0] sm:$0xff]   ;;  %v5137_v50 = vld [vmem:[%s5676_s21 + $0x68] sm:$0xff]  }
 0x4aa   : > { %2480 = vmatprep.subr.bf16.mxu0 %v4410_v51  ;;  %2523 = vmatprep.subr.bf16.mxu1 %v4412_v52  ;;  %v5138_v51 = vld [vmem:[%s5676_s21 + $0xe8] sm:$0xff]  }
 0x4ab   : > { %2510 = vmatprep.mubr.bf16.mxu0 %v5464_v24  ;;  %2553 = vmatprep.mubr.bf16.mxu1 %v5464_v24  ;;  %v4379_v24 = vcombine.low %v1439_v63, %v1447_v0  ;;  %v5139_v52 = vld [vmem:[%s5676_s21 + $0x28] sm:$0xff]   ;;  %v5151_v63 = vld [vmem:[%s5676_s21 + $0x10] sm:$0xff]  }
 0x4ac   : > { %v5152_v0 = vld [vmem:[%s5676_s21 + $0x90] sm:$0xff]  }
 0x4ad   : > { %2481 = vmatpush1.bf16.msra.mxu0 %v4409_v57  ;;  %2524 = vmatpush1.bf16.msra.mxu1 %v4411_v58  ;;  %v5145_v57 = vld [vmem:[%s5676_s21 + $0x58] sm:$0xff]  }
 0x4ae   : > { %2482 = vmatprep.subr.bf16.mxu0 %v4394_v59  ;;  %2525 = vmatprep.subr.bf16.mxu1 %v4396_v60  ;;  %v5146_v58 = vld [vmem:[%s5676_s21 + $0xd8] sm:$0xff]  }
 0x4af   : > { %v5147_v59 = vld [vmem:[%s5676_s21 + $0x18] sm:$0xff]  }
 0x4b0   : > { %v5148_v60 = vld [vmem:[%s5676_s21 + $0x98] sm:$0xff]  }
 0x4b1   : > { %2483 = vmatpush1.bf16.msra.mxu0 %v4393_v1  ;;  %2526 = vmatpush1.bf16.msra.mxu1 %v4395_v2  ;;  %v5153_v1 = vld [vmem:[%s5676_s21 + $0x48] sm:$0xff]  }
 0x4b2   : > { %2484 = vmatprep.subr.bf16.mxu0 %v4378_v3  ;;  %2527 = vmatprep.subr.bf16.mxu1 %v4380_v4  ;;  %v5154_v2 = vld [vmem:[%s5676_s21 + $0xc8] sm:$0xff]  }
 0x4b3   : > { %v5155_v3 = vld [vmem:[%s5676_s21 + $0x8] sm:$0xff]  }
 0x4b4   : > { %v5156_v4 = vld [vmem:[%s5676_s21 + $0x88] sm:$0xff]  }
 0x4b5   : > { %2485 = vmatpush1.bf16.msra.mxu0 %v4377_v10  ;;  %2528 = vmatpush1.bf16.msra.mxu1 %v4379_v24  ;;  %v5161_v10 = vld [vmem:[%s5676_s21 + $0x178] sm:$0xff]  }
 0x4b6   : > { %2486 = vmatprep.subr.bf16.mxu0 %v4362_v11  ;;  %2529 = vmatprep.subr.bf16.mxu1 %v4364_v12  ;;  %v5162_v24 = vld [vmem:[%s5676_s21 + $0x1f8] sm:$0xff]   ;;  %v1500_v11 = vlaneseq }
 0x4b8   : > { %v6103_v12 = vshrl.u32 %v1500_v11, 7 }
 0x4b9   : > { %2487 = vmatpush1.bf16.msra.mxu0 %v4361_v18  ;;  %2530 = vmatpush1.bf16.msra.mxu1 %v4363_v19  ;;  %v6110_v18 = vld [vmem:[%s5712_s0] sm:$0xff] }
 0x4ba   : > { %2488 = vmatprep.subr.bf16.mxu0 %v4346_v21  ;;  %2531 = vmatprep.subr.bf16.mxu1 %v4348_v22  ;;  %v1506_v13 = vsub.s32 1, %v6103_v12  ;;  %v1514_v14 = vsub.s32 3, %v6103_v12  ;;  %v1502_v15 = vsub.s32 0, %v6103_v12  ;;  %v1510_v17 = vsub.s32 2, %v6103_v12 }
 0x4bb   : > { %v1526_v11 = vsub.s32 6, %v6103_v12 }
 0x4bc   : > { %v1507_v22 = vrot.slane %v6110_v18, %v1506_v13  ;;  %v1515_v23 = vrot.slane %v6110_v18, %v1514_v14  ;;  %v1503_v25 = vrot.slane %v6110_v18, %v1502_v15  ;;  %v1511_v5 = vrot.slane %v6110_v18, %v1510_v17 }
 0x4bd   : > { %2489 = vmatpush1.bf16.msra.mxu0 %v4345_v27  ;;  %2532 = vmatpush1.bf16.msra.mxu1 %v4347_v28 }
 0x4be   : > { %2490 = vmatprep.subr.bf16.mxu0 %v4330_v29  ;;  %2533 = vmatprep.subr.bf16.mxu1 %v4332_v30 }
 0x4c1   : > { %2491 = vmatpush1.bf16.msra.mxu0 %v4329_v35  ;;  %2534 = vmatpush1.bf16.msra.mxu1 %v4331_v36 }
 0x4c2   : > { %2492 = vmatprep.subr.bf16.mxu0 %v4314_v37  ;;  %2535 = vmatprep.subr.bf16.mxu1 %v4316_v38 }
 0x4c5   : > { %2493 = vmatpush1.bf16.msra.mxu0 %v4313_v39  ;;  %2536 = vmatpush1.bf16.msra.mxu1 %v4315_v40 }
 0x4c6   : > { %4644 = vmatprep.subr.bf16.mxu0 %v5129_v41  ;;  %4666 = vmatprep.subr.bf16.mxu1 %v5130_v44 }
 0x4c8   : > { %2511 = vmatmul.mubr.bf16.vlgmr.msra.gmra.mxu0 %v5965_v16  ;;  %2554 = vmatmul.mubr.bf16.vlgmr.msra.gmra.mxu1 %v5965_v16  ;;  %v5141_v16 = vld [vmem:[%s5676_s21 + $0x60] sm:$0xff]  }
 0x4c9   : > { %4645 = vmatpush3.bf16.msra.mxu0 %v5131_v45  ;;  %4667 = vmatpush3.bf16.msra.mxu1 %v5132_v46 }
 0x4ca   : > { %4646 = vmatprep.subr.bf16.mxu0 %v5133_v20  ;;  %4668 = vmatprep.subr.bf16.mxu1 %v5134_v47 }
 0x4cd   : > { %4647 = vmatpush3.bf16.msra.mxu0 %v5135_v48  ;;  %4669 = vmatpush3.bf16.msra.mxu1 %v5136_v49 }
 0x4ce   : > { %4648 = vmatprep.subr.bf16.mxu0 %v5137_v50  ;;  %4670 = vmatprep.subr.bf16.mxu1 %v5138_v51  ;;  %v5163_v51 = vld [vmem:[%s5676_s21 + $0x138] sm:$0xff]  }
 0x4d1   : > { %4649 = vmatpush3.bf16.msra.mxu0 %v5139_v52  ;;  %4671 = vmatpush3.bf16.msra.mxu1 %v5140_v53  ;;  %v5164_v52 = vld [vmem:[%s5676_s21 + $0x1b8] sm:$0xff]  }
 0x4d2   : > { %4650 = vmatprep.subr.bf16.mxu0 %v5141_v16  ;;  %4672 = vmatprep.subr.bf16.mxu1 %v5142_v54  ;;  %v5165_v54 = vld [vmem:[%s5676_s21 + $0x170] sm:$0xff]  }
 0x4d5   : > { %4651 = vmatpush3.bf16.msra.mxu0 %v5143_v55  ;;  %4673 = vmatpush3.bf16.msra.mxu1 %v5144_v56  ;;  %v5166_v55 = vld [vmem:[%s5676_s21 + $0x1f0] sm:$0xff]  }
 0x4d6   : > { %4652 = vmatprep.subr.bf16.mxu0 %v5145_v57  ;;  %4674 = vmatprep.subr.bf16.mxu1 %v5146_v58  ;;  %v5167_v56 = vld [vmem:[%s5676_s21 + $0x130] sm:$0xff]   ;;  %v5169_v58 = vld [vmem:[%s5676_s21 + $0x168] sm:$0xff]  }
 0x4d7   : > { %v5168_v57 = vld [vmem:[%s5676_s21 + $0x1b0] sm:$0xff]  }
 0x4d9   : > { %4653 = vmatpush3.bf16.msra.mxu0 %v5147_v59  ;;  %4675 = vmatpush3.bf16.msra.mxu1 %v5148_v60  ;;  %v5170_v59 = vld [vmem:[%s5676_s21 + $0x1e8] sm:$0xff]  }
 0x4da   : > { %4654 = vmatprep.subr.bf16.mxu0 %v5149_v61  ;;  %4676 = vmatprep.subr.bf16.mxu1 %v5150_v62  ;;  %v5171_v60 = vld [vmem:[%s5676_s21 + $0x128] sm:$0xff]   ;;  %v5173_v62 = vld [vmem:[%s5676_s21 + $0x160] sm:$0xff]  }
 0x4db   : > { %v5172_v61 = vld [vmem:[%s5676_s21 + $0x1a8] sm:$0xff]  }
 0x4dd   : > { %4655 = vmatpush3.bf16.msra.mxu0 %v5151_v63  ;;  %4677 = vmatpush3.bf16.msra.mxu1 %v5152_v0  ;;  %v5174_v63 = vld [vmem:[%s5676_s21 + $0x1e0] sm:$0xff]  }
 0x4de   : > { %4656 = vmatprep.subr.bf16.mxu0 %v5153_v1  ;;  %4678 = vmatprep.subr.bf16.mxu1 %v5154_v2  ;;  %v5175_v0 = vld [vmem:[%s5676_s21 + $0x120] sm:$0xff]   ;;  %v5177_v2 = vld [vmem:[%s5676_s21 + $0x158] sm:$0xff]  }
 0x4df   : > { %v5176_v1 = vld [vmem:[%s5676_s21 + $0x1a0] sm:$0xff]  }
 0x4e1   : > { %4657 = vmatpush3.bf16.msra.mxu0 %v5155_v3  ;;  %4679 = vmatpush3.bf16.msra.mxu1 %v5156_v4  ;;  %v5178_v3 = vld [vmem:[%s5676_s21 + $0x1d8] sm:$0xff]  }
 0x4e2   : > { %4658 = vmatprep.subr.bf16.mxu0 %v5157_v6  ;;  %4680 = vmatprep.subr.bf16.mxu1 %v5158_v7  ;;  %v5179_v4 = vld [vmem:[%s5676_s21 + $0x118] sm:$0xff]   ;;  %v5181_v7 = vld [vmem:[%s5676_s21 + $0x150] sm:$0xff]  }
 0x4e3   : > { %v5180_v6 = vld [vmem:[%s5676_s21 + $0x198] sm:$0xff]  }
 0x4e5   : > { %4659 = vmatpush3.bf16.msra.mxu0 %v5159_v8  ;;  %4681 = vmatpush3.bf16.msra.mxu1 %v5160_v9  ;;  %v5182_v8 = vld [vmem:[%s5676_s21 + $0x1d0] sm:$0xff]   ;;  %v1522_v9 = vsub.s32 5, %v6103_v12 }
 0x4e6   : > { %4688 = vmatprep.subr.bf16.mxu0 %v5161_v10  ;;  %4710 = vmatprep.subr.bf16.mxu1 %v5162_v24  ;;  %v1530_v10 = vsub.s32 7, %v6103_v12  ;;  %v1518_v24 = vsub.s32 4, %v6103_v12 }
 0x528   : > { %v2254_v19 = vpop.f32.mrf.mxu0  ;;  %v2297_v21 = vpop.f32.mrf.mxu1 }
 0x529   : > { %v2255_v34 = vadd.f32 %v2254_v19, %v1503_v25  ;;  %v2298_v35 = vadd.f32 %v2297_v21, %v1511_v5  ;;  %v5183_v19 = vld [vmem:[%s5676_s21 + $0x110] sm:$0xff]  }
 0x52a   : > { %v2256_v26 = vpop.f32.mrf.mxu0  ;;  %v2299_v27 = vpop.f32.mrf.mxu1  ;;  %v5184_v21 = vld [vmem:[%s5676_s21 + $0x190] sm:$0xff]  }
 0x52b   : > { %v2257_v30 = vadd.f32 %v2256_v26, %v1507_v22  ;;  %v2300_v31 = vadd.f32 %v2299_v27, %v1515_v23  ;;  %v2564_v47 = vmax.f32 %v2255_v34, 0.0  ;;  %v2566_v48 = vmax.f32 %v2298_v35, 0.0 }
 0x52c   : > { %v2258_v28 = vpop.f32.mrf.mxu0  ;;  %v2301_v29 = vpop.f32.mrf.mxu1  ;;  %v1523_v26 = vrot.slane %v6110_v18, %v1522_v9  ;;  %v1531_v27 = vrot.slane %v6110_v18, %v1530_v10 }
 0x52d   : > { %v2259_v32 = vadd.f32 %v2258_v28, %v1503_v25  ;;  %v2302_v33 = vadd.f32 %v2301_v29, %v1511_v5  ;;  %v2565_v44 = vmax.f32 %v2257_v30, 0.0  ;;  %v2567_v45 = vmax.f32 %v2300_v31, 0.0  ;;  %v5185_v25 = vld [vmem:[%s5676_s21 + $0x148] sm:$0xff]  }
 0x52e   : > { %v2260_v36 = vpop.f32.mrf.mxu0  ;;  %v2303_v37 = vpop.f32.mrf.mxu1  ;;  %v5186_v5 = vld [vmem:[%s5676_s21 + $0x1c8] sm:$0xff]   ;;  %v1519_v28 = vrot.slane %v6110_v18, %v1518_v24  ;;  %v1527_v29 = vrot.slane %v6110_v18, %v1526_v11 }
 0x52f   : > { %v2261_v38 = vadd.f32 %v2260_v36, %v1507_v22  ;;  %v2304_v39 = vadd.f32 %v2303_v37, %v1515_v23  ;;  %v2580_v40 = vmax.f32 %v2259_v32, 0.0  ;;  %v2582_v41 = vmax.f32 %v2302_v33, 0.0  ;;  %v5187_v32 = vld [vmem:[%s5676_s21 + $0x108] sm:$0xff]   ;;  %v5189_v36 = vld [vmem:[%s5676_s21 + $0x140] sm:$0xff]  }
 0x530   : > { %v5188_v33 = vld [vmem:[%s5676_s21 + $0x188] sm:$0xff]   ;;  %v5190_v37 = vld [vmem:[%s5676_s21 + $0x1c0] sm:$0xff]  }
 0x531   : > { %v2581_v46 = vmax.f32 %v2261_v38, 0.0  ;;  %v2583_v20 = vmax.f32 %v2304_v39, 0.0  ;;  %v2596_v53 = vpack.c.bf16 %v2580_v40, %v2564_v47  ;;  %v2598_v16 = vpack.c.bf16 %v2582_v41, %v2566_v48  ;;  %v5191_v48 = vld [vmem:[%s5676_s21 + $0x100] sm:$0xff]  }
 0x533   : > { %v2597_v49 = vpack.c.bf16 %v2581_v46, %v2565_v44  ;;  %v2599_v50 = vpack.c.bf16 %v2583_v20, %v2567_v45 }
 0x535   : > { %3673 = vmatprep.mubr.bf16.mxu0 %v2597_v49  ;;  %3714 = vmatprep.mubr.bf16.mxu1 %v2599_v50  ;;  %v5192_v49 = vld [vmem:[%s5676_s21 + $0x180] sm:$0xff]  }
 0x536   : > { %3674 = vmatmul.mubr.bf16.vlgmr.msra.gmra.mxu0 %v2596_v53  ;;  %3715 = vmatmul.mubr.bf16.vlgmr.msra.gmra.mxu1 %v2598_v16  ;;  %v5194_v53 = vld [vmem:[%s5676_s21 + $0x2f8] sm:$0xff]  }
 0x537   : > { %4689 = vmatpush3.bf16.msra.mxu0 %v5163_v51  ;;  %4711 = vmatpush3.bf16.msra.mxu1 %v5164_v52  ;;  %v5193_v52 = vld [vmem:[%s5676_s21 + $0x278] sm:$0xff]  }
 0x538   : > { %4690 = vmatprep.subr.bf16.mxu0 %v5165_v54  ;;  %4712 = vmatprep.subr.bf16.mxu1 %v5166_v55 }
 0x53b   : > { %4691 = vmatpush3.bf16.msra.mxu0 %v5167_v56  ;;  %4713 = vmatpush3.bf16.msra.mxu1 %v5168_v57 }
 0x53c   : > { %4692 = vmatprep.subr.bf16.mxu0 %v5169_v58  ;;  %4714 = vmatprep.subr.bf16.mxu1 %v5170_v59 }
 0x53f   : > { %4693 = vmatpush3.bf16.msra.mxu0 %v5171_v60  ;;  %4715 = vmatpush3.bf16.msra.mxu1 %v5172_v61  ;;  %v5195_v61 = vld [vmem:[%s5676_s21 + $0x238] sm:$0xff]  }
 0x540   : > { %4694 = vmatprep.subr.bf16.mxu0 %v5173_v62  ;;  %4716 = vmatprep.subr.bf16.mxu1 %v5174_v63  ;;  %v5196_v62 = vld [vmem:[%s5676_s21 + $0x2b8] sm:$0xff]  }
 0x543   : > { %4695 = vmatpush3.bf16.msra.mxu0 %v5175_v0  ;;  %4717 = vmatpush3.bf16.msra.mxu1 %v5176_v1  ;;  %v5197_v1 = vld [vmem:[%s5676_s21 + $0x270] sm:$0xff]  }
 0x544   : > { %4696 = vmatprep.subr.bf16.mxu0 %v5177_v2  ;;  %4718 = vmatprep.subr.bf16.mxu1 %v5178_v3  ;;  %v5198_v2 = vld [vmem:[%s5676_s21 + $0x2f0] sm:$0xff]  }
 0x545   : > { %v5199_v3 = vld [vmem:[%s5676_s21 + $0x230] sm:$0xff]  }
 0x547   : > { %4697 = vmatpush3.bf16.msra.mxu0 %v5179_v4  ;;  %4719 = vmatpush3.bf16.msra.mxu1 %v5180_v6  ;;  %v5200_v4 = vld [vmem:[%s5676_s21 + $0x2b0] sm:$0xff]   ;;  %v5201_v6 = vld [vmem:[%s5676_s21 + $0x268] sm:$0xff]  }
 0x548   : > { %v2340_v22 = vpop.f32.mrf.mxu0  ;;  %v2383_v23 = vpop.f32.mrf.mxu1  ;;  %4698 = vmatprep.subr.bf16.mxu0 %v5181_v7  ;;  %4720 = vmatprep.subr.bf16.mxu1 %v5182_v8  ;;  %v5202_v7 = vld [vmem:[%s5676_s21 + $0x2e8] sm:$0xff]  }
 0x549   : > { %v2341_v18 = vadd.f32 %v2340_v22, %v1519_v28  ;;  %v2384_v44 = vadd.f32 %v2383_v23, %v1527_v29  ;;  %v5203_v8 = vld [vmem:[%s5676_s21 + $0x228] sm:$0xff]   ;;  %v5206_v22 = vld [vmem:[%s5676_s21 + $0x2e0] sm:$0xff]  }
 0x54a   : > { %v2342_v30 = vpop.f32.mrf.mxu0  ;;  %v2385_v31 = vpop.f32.mrf.mxu1  ;;  %v5207_v23 = vld [vmem:[%s5676_s21 + $0x220] sm:$0xff]  }
 0x54b   : > { %4699 = vmatpush3.bf16.msra.mxu0 %v5183_v19  ;;  %4721 = vmatpush3.bf16.msra.mxu1 %v5184_v21  ;;  %v2343_v38 = vadd.f32 %v2342_v30, %v1523_v26  ;;  %v2386_v39 = vadd.f32 %v2385_v31, %v1531_v27  ;;  %v2568_v57 = vmax.f32 %v2341_v18, 0.0  ;;  %v2570_v58 = vmax.f32 %v2384_v44, 0.0  ;;  %v5204_v19 = vld [vmem:[%s5676_s21 + $0x2a8] sm:$0xff]   ;;  %v5205_v21 = vld [vmem:[%s5676_s21 + $0x260] sm:$0xff]   ;;  %v5214_v30 = vld [vmem:[%s5676_s21 + $0x2d0] sm:$0xff]  }
 0x54c   : > { %v2344_v34 = vpop.f32.mrf.mxu0  ;;  %v2387_v35 = vpop.f32.mrf.mxu1  ;;  %4700 = vmatprep.subr.bf16.mxu0 %v5185_v25  ;;  %4722 = vmatprep.subr.bf16.mxu1 %v5186_v5  ;;  %v5208_v25 = vld [vmem:[%s5676_s21 + $0x2a0] sm:$0xff]   ;;  %v5209_v5 = vld [vmem:[%s5676_s21 + $0x258] sm:$0xff]   ;;  %v6193_v31 = vld [vmem:[%s5712_s0 + $0x8] sm:$0xff] }
 0x54d   : > { %v2345_v40 = vadd.f32 %v2344_v34, %v1519_v28  ;;  %v2388_v41 = vadd.f32 %v2387_v35, %v1527_v29  ;;  %v2569_v16 = vmax.f32 %v2343_v38, 0.0  ;;  %v2571_v54 = vmax.f32 %v2386_v39, 0.0  ;;  %v5212_v28 = vld [vmem:[%s5676_s21 + $0x298] sm:$0xff]   ;;  %v5213_v29 = vld [vmem:[%s5676_s21 + $0x250] sm:$0xff]  }
 0x54e   : > { %v2346_v45 = vpop.f32.mrf.mxu0  ;;  %v2389_v46 = vpop.f32.mrf.mxu1  ;;  %v1539_v38 = vrot.slane %v6193_v31, %v1506_v13  ;;  %v1547_v39 = vrot.slane %v6193_v31, %v1514_v14  ;;  %v5221_v14 = vld [vmem:[%s5676_s21 + $0x240] sm:$0xff]  }
 0x54f   : > { %v2347_v20 = vadd.f32 %v2346_v45, %v1523_v26  ;;  %v2390_v47 = vadd.f32 %v2389_v46, %v1531_v27  ;;  %4701 = vmatpush3.bf16.msra.mxu0 %v5187_v32  ;;  %4723 = vmatpush3.bf16.msra.mxu1 %v5188_v33  ;;  %v2584_v50 = vmax.f32 %v2345_v40, 0.0  ;;  %v2586_v51 = vmax.f32 %v2388_v41, 0.0  ;;  %v5210_v26 = vld [vmem:[%s5676_s21 + $0x2d8] sm:$0xff]   ;;  %v5215_v32 = vld [vmem:[%s5676_s21 + $0x210] sm:$0xff]   ;;  %v5219_v45 = vld [vmem:[%s5676_s21 + $0x208] sm:$0xff]  }
 0x550   : > { %4702 = vmatprep.subr.bf16.mxu0 %v5189_v36  ;;  %4724 = vmatprep.subr.bf16.mxu1 %v5190_v37  ;;  %v5211_v27 = vld [vmem:[%s5676_s21 + $0x218] sm:$0xff]   ;;  %v5216_v33 = vld [vmem:[%s5676_s21 + $0x290] sm:$0xff]   ;;  %v5217_v36 = vld [vmem:[%s5676_s21 + $0x248] sm:$0xff]   ;;  %v1535_v40 = vrot.slane %v6193_v31, %v1502_v15  ;;  %v1543_v41 = vrot.slane %v6193_v31, %v1510_v17 }
 0x551   : > { %v2585_v55 = vmax.f32 %v2347_v20, 0.0  ;;  %v2587_v56 = vmax.f32 %v2390_v47, 0.0  ;;  %v2600_v63 = vpack.c.bf16 %v2584_v50, %v2568_v57  ;;  %v2602_v0 = vpack.c.bf16 %v2586_v51, %v2570_v58  ;;  %v5218_v37 = vld [vmem:[%s5676_s21 + $0x2c8] sm:$0xff]   ;;  %v5222_v47 = vld [vmem:[%s5676_s21 + $0x2c0] sm:$0xff]  }
 0x552   : > { %v5220_v46 = vld [vmem:[%s5676_s21 + $0x288] sm:$0xff]  }
 0x553   : > { %v2601_v59 = vpack.c.bf16 %v2585_v55, %v2569_v16  ;;  %v2603_v60 = vpack.c.bf16 %v2587_v56, %v2571_v54  ;;  %4703 = vmatpush3.bf16.msra.mxu0 %v5191_v48  ;;  %4725 = vmatpush3.bf16.msra.mxu1 %v5192_v49  ;;  %v5223_v55 = vld [vmem:[%s5676_s21 + $0x200] sm:$0xff]  }
 0x554   : > { %4732 = vmatprep.subr.bf16.mxu0 %v5193_v52  ;;  %4754 = vmatprep.subr.bf16.mxu1 %v5194_v53  ;;  %v5224_v56 = vld [vmem:[%s5676_s21 + $0x280] sm:$0xff]  }
 0x555   : > { %3755 = vmatprep.mubr.bf16.mxu0 %v2601_v59  ;;  %3796 = vmatprep.mubr.bf16.mxu1 %v2603_v60  ;;  %v5225_v59 = vld [vmem:[%s5676_s21 + $0x378] sm:$0xff]  }
 0x556   : > { %3756 = vmatmul.mubr.bf16.vlgmr.msra.gmra.mxu0 %v2600_v63  ;;  %3797 = vmatmul.mubr.bf16.vlgmr.msra.gmra.mxu1 %v2602_v0  ;;  %v5226_v60 = vld [vmem:[%s5676_s21 + $0x3f8] sm:$0xff]  }
 0x557   : > { %4733 = vmatpush3.bf16.msra.mxu0 %v5195_v61  ;;  %4755 = vmatpush3.bf16.msra.mxu1 %v5196_v62 }
 0x558   : > { %4734 = vmatprep.subr.bf16.mxu0 %v5197_v1  ;;  %4756 = vmatprep.subr.bf16.mxu1 %v5198_v2 }
 0x55b   : > { %4735 = vmatpush3.bf16.msra.mxu0 %v5199_v3  ;;  %4757 = vmatpush3.bf16.msra.mxu1 %v5200_v4 }
 0x55c   : > { %4736 = vmatprep.subr.bf16.mxu0 %v5201_v6  ;;  %4758 = vmatprep.subr.bf16.mxu1 %v5202_v7  ;;  %v5227_v6 = vld [vmem:[%s5676_s21 + $0x338] sm:$0xff]  }
 0x55d   : > { %v5228_v7 = vld [vmem:[%s5676_s21 + $0x3b8] sm:$0xff]  }
 0x55f   : > { %4737 = vmatpush3.bf16.msra.mxu0 %v5203_v8  ;;  %4759 = vmatpush3.bf16.msra.mxu1 %v5204_v19 }
 0x560   : > { %4738 = vmatprep.subr.bf16.mxu0 %v5205_v21  ;;  %4760 = vmatprep.subr.bf16.mxu1 %v5206_v22  ;;  %v5229_v21 = vld [vmem:[%s5676_s21 + $0x370] sm:$0xff]  }
 0x561   : > { %v5230_v22 = vld [vmem:[%s5676_s21 + $0x3f0] sm:$0xff]  }
 0x563   : > { %4739 = vmatpush3.bf16.msra.mxu0 %v5207_v23  ;;  %4761 = vmatpush3.bf16.msra.mxu1 %v5208_v25  ;;  %v5231_v23 = vld [vmem:[%s5676_s21 + $0x330] sm:$0xff]  }
 0x564   : > { %4740 = vmatprep.subr.bf16.mxu0 %v5209_v5  ;;  %4762 = vmatprep.subr.bf16.mxu1 %v5210_v26  ;;  %v5232_v25 = vld [vmem:[%s5676_s21 + $0x3b0] sm:$0xff]   ;;  %v5233_v5 = vld [vmem:[%s5676_s21 + $0x368] sm:$0xff]  }
 0x565   : > { %v5234_v26 = vld [vmem:[%s5676_s21 + $0x3e8] sm:$0xff]  }
 0x567   : > { %4741 = vmatpush3.bf16.msra.mxu0 %v5211_v27  ;;  %4763 = vmatpush3.bf16.msra.mxu1 %v5212_v28  ;;  %v5235_v27 = vld [vmem:[%s5676_s21 + $0x328] sm:$0xff]  }
 0x568   : > { %v2426_v34 = vpop.f32.mrf.mxu0  ;;  %v2469_v35 = vpop.f32.mrf.mxu1  ;;  %4742 = vmatprep.subr.bf16.mxu0 %v5213_v29  ;;  %4764 = vmatprep.subr.bf16.mxu1 %v5214_v30  ;;  %v5236_v28 = vld [vmem:[%s5676_s21 + $0x3a8] sm:$0xff]   ;;  %v5237_v29 = vld [vmem:[%s5676_s21 + $0x360] sm:$0xff]  }
 0x569   : > { %v2427_v17 = vadd.f32 %v2426_v34, %v1535_v40  ;;  %v2470_v51 = vadd.f32 %v2469_v35, %v1543_v41  ;;  %v5238_v30 = vld [vmem:[%s5676_s21 + $0x3e0] sm:$0xff]   ;;  %v5241_v34 = vld [vmem:[%s5676_s21 + $0x358] sm:$0xff]  }
 0x56a   : > { %v2428_v18 = vpop.f32.mrf.mxu0  ;;  %v2471_v44 = vpop.f32.mrf.mxu1  ;;  %v5242_v35 = vld [vmem:[%s5676_s21 + $0x3d8] sm:$0xff]  }
 0x56b   : > { %4743 = vmatpush3.bf16.msra.mxu0 %v5215_v32  ;;  %4765 = vmatpush3.bf16.msra.mxu1 %v5216_v33  ;;  %v2429_v48 = vadd.f32 %v2428_v18, %v1539_v38  ;;  %v2472_v15 = vadd.f32 %v2471_v44, %v1547_v39  ;;  %v2572_v1 = vmax.f32 %v2427_v17, 0.0  ;;  %v2574_v2 = vmax.f32 %v2470_v51, 0.0  ;;  %v5239_v32 = vld [vmem:[%s5676_s21 + $0x320] sm:$0xff]  }
 0x56c   : > { %v2430_v20 = vpop.f32.mrf.mxu0  ;;  %v2473_v13 = vpop.f32.mrf.mxu1  ;;  %4744 = vmatprep.subr.bf16.mxu0 %v5217_v36  ;;  %4766 = vmatprep.subr.bf16.mxu1 %v5218_v37  ;;  %v5240_v33 = vld [vmem:[%s5676_s21 + $0x3a0] sm:$0xff]   ;;  %v5243_v36 = vld [vmem:[%s5676_s21 + $0x318] sm:$0xff]  }
 0x56d   : > { %v2431_v49 = vadd.f32 %v2430_v20, %v1535_v40  ;;  %v2474_v50 = vadd.f32 %v2473_v13, %v1543_v41  ;;  %v2573_v61 = vmax.f32 %v2429_v48, 0.0  ;;  %v2575_v62 = vmax.f32 %v2472_v15, 0.0  ;;  %v5244_v37 = vld [vmem:[%s5676_s21 + $0x398] sm:$0xff]   ;;  %v5247_v40 = vld [vmem:[%s5676_s21 + $0x310] sm:$0xff]   ;;  %v5254_v51 = vld [vmem:[%s5676_s21 + $0x3c0] sm:$0xff]  }
 0x56e   : > { %v2432_v52 = vpop.f32.mrf.mxu0  ;;  %v2475_v53 = vpop.f32.mrf.mxu1  ;;  %v5248_v41 = vld [vmem:[%s5676_s21 + $0x390] sm:$0xff]   ;;  %v1555_v20 = vrot.slane %v6193_v31, %v1522_v9  ;;  %v1563_v13 = vrot.slane %v6193_v31, %v1530_v10  ;;  %v5253_v10 = vld [vmem:[%s5676_s21 + $0x340] sm:$0xff]  }
 0x56f   : > { %v2433_v16 = vadd.f32 %v2432_v52, %v1539_v38  ;;  %v2476_v54 = vadd.f32 %v2475_v53, %v1547_v39  ;;  %4745 = vmatpush3.bf16.msra.mxu0 %v5219_v45  ;;  %4767 = vmatpush3.bf16.msra.mxu1 %v5220_v46  ;;  %v2588_v57 = vmax.f32 %v2431_v49, 0.0  ;;  %v2590_v58 = vmax.f32 %v2474_v50, 0.0  ;;  %v5245_v38 = vld [vmem:[%s5676_s21 + $0x350] sm:$0xff]   ;;  %v5249_v45 = vld [vmem:[%s5676_s21 + $0x348] sm:$0xff]  }
 0x570   : > { %4746 = vmatprep.subr.bf16.mxu0 %v5221_v14  ;;  %4768 = vmatprep.subr.bf16.mxu1 %v5222_v47  ;;  %v5246_v39 = vld [vmem:[%s5676_s21 + $0x3d0] sm:$0xff]   ;;  %v5250_v46 = vld [vmem:[%s5676_s21 + $0x3c8] sm:$0xff]   ;;  %v1551_v14 = vrot.slane %v6193_v31, %v1518_v24  ;;  %v1559_v47 = vrot.slane %v6193_v31, %v1526_v11 }
 0x571   : > { %v2589_v63 = vmax.f32 %v2433_v16, 0.0  ;;  %v2591_v0 = vmax.f32 %v2476_v54, 0.0  ;;  %v2604_v8 = vpack.c.bf16 %v2588_v57, %v2572_v1  ;;  %v2606_v19 = vpack.c.bf16 %v2590_v58, %v2574_v2  ;;  %v5251_v49 = vld [vmem:[%s5676_s21 + $0x308] sm:$0xff]   ;;  %v5255_v57 = vld [vmem:[%s5676_s21 + $0x300] sm:$0xff]  }
 0x572   : > { %v5252_v50 = vld [vmem:[%s5676_s21 + $0x388] sm:$0xff]   ;;  %v5256_v58 = vld [vmem:[%s5676_s21 + $0x380] sm:$0xff]  }
 0x573   : > { %v2605_v3 = vpack.c.bf16 %v2589_v63, %v2573_v61  ;;  %v2607_v4 = vpack.c.bf16 %v2591_v0, %v2575_v62  ;;  %4747 = vmatpush3.bf16.msra.mxu0 %v5223_v55  ;;  %4769 = vmatpush3.bf16.msra.mxu1 %v5224_v56 }
 0x574   : > { %4776 = vmatprep.subr.bf16.mxu0 %v5225_v59  ;;  %4798 = vmatprep.subr.bf16.mxu1 %v5226_v60 }
 0x575   : > { %3837 = vmatprep.mubr.bf16.mxu0 %v2605_v3  ;;  %3878 = vmatprep.mubr.bf16.mxu1 %v2607_v4 }
 0x576   : > { %3838 = vmatmul.mubr.bf16.vlgmr.msra.gmra.mxu0 %v2604_v8  ;;  %3879 = vmatmul.mubr.bf16.vlgmr.msra.gmra.mxu1 %v2606_v19 }
 0x577   : > { %4777 = vmatpush3.bf16.msra.mxu0 %v5227_v6  ;;  %4799 = vmatpush3.bf16.msra.mxu1 %v5228_v7 }
 0x578   : > { %4778 = vmatprep.subr.bf16.mxu0 %v5229_v21  ;;  %4800 = vmatprep.subr.bf16.mxu1 %v5230_v22 }
 0x57b   : > { %4779 = vmatpush3.bf16.msra.mxu0 %v5231_v23  ;;  %4801 = vmatpush3.bf16.msra.mxu1 %v5232_v25 }
 0x57c   : > { %4780 = vmatprep.subr.bf16.mxu0 %v5233_v5  ;;  %4802 = vmatprep.subr.bf16.mxu1 %v5234_v26 }
 0x57f   : > { %4781 = vmatpush3.bf16.msra.mxu0 %v5235_v27  ;;  %4803 = vmatpush3.bf16.msra.mxu1 %v5236_v28 }
 0x580   : > { %4782 = vmatprep.subr.bf16.mxu0 %v5237_v29  ;;  %4804 = vmatprep.subr.bf16.mxu1 %v5238_v30 }
 0x583   : > { %4783 = vmatpush3.bf16.msra.mxu0 %v5239_v32  ;;  %4805 = vmatpush3.bf16.msra.mxu1 %v5240_v33 }
 0x584   : > { %4784 = vmatprep.subr.bf16.mxu0 %v5241_v34  ;;  %4806 = vmatprep.subr.bf16.mxu1 %v5242_v35 }
 0x587   : > { %4785 = vmatpush3.bf16.msra.mxu0 %v5243_v36  ;;  %4807 = vmatpush3.bf16.msra.mxu1 %v5244_v37  ;;  %v4429_v36 = vld [vmem:[%s5707_s10 + $0x4] ss:$0 sm:$0xff] }
 0x588   : > { %v2512_v18 = vpop.f32.mrf.mxu0  ;;  %v2555_v44 = vpop.f32.mrf.mxu1  ;;  %4786 = vmatprep.subr.bf16.mxu0 %v5245_v38  ;;  %4808 = vmatprep.subr.bf16.mxu1 %v5246_v39 }
 0x589   : > { %v2513_v16 = vadd.f32 %v2512_v18, %v1551_v14  ;;  %v2556_v11 = vadd.f32 %v2555_v44, %v1559_v47 }
 0x58a   : > { %v2514_v48 = vpop.f32.mrf.mxu0  ;;  %v2557_v15 = vpop.f32.mrf.mxu1 }
 0x58b   : > { %4787 = vmatpush3.bf16.msra.mxu0 %v5247_v40  ;;  %4809 = vmatpush3.bf16.msra.mxu1 %v5248_v41  ;;  %v2515_v52 = vadd.f32 %v2514_v48, %v1555_v20  ;;  %v2558_v24 = vadd.f32 %v2557_v15, %v1563_v13  ;;  %v2576_v1 = vmax.f32 %v2513_v16, 0.0  ;;  %v2578_v2 = vmax.f32 %v2556_v11, 0.0 }
 0x58c   : > { %v2516_v17 = vpop.f32.mrf.mxu0  ;;  %v2559_v9 = vpop.f32.mrf.mxu1  ;;  %4788 = vmatprep.subr.bf16.mxu0 %v5249_v45  ;;  %4810 = vmatprep.subr.bf16.mxu1 %v5250_v46 }
 0x58d   : > { %v2517_v53 = vadd.f32 %v2516_v17, %v1551_v14  ;;  %v2560_v12 = vadd.f32 %v2559_v9, %v1559_v47  ;;  %v2577_v61 = vmax.f32 %v2515_v52, 0.0  ;;  %v2579_v62 = vmax.f32 %v2558_v24, 0.0 }
 0x58e   : > { %v2518_v31 = vpop.f32.mrf.mxu0  ;;  %v2561_v54 = vpop.f32.mrf.mxu1 }
 0x58f   : > { %v2519_v55 = vadd.f32 %v2518_v31, %v1555_v20  ;;  %v2562_v56 = vadd.f32 %v2561_v54, %v1563_v13  ;;  %4789 = vmatpush3.bf16.msra.mxu0 %v5251_v49  ;;  %4811 = vmatpush3.bf16.msra.mxu1 %v5252_v50  ;;  %v2592_v59 = vmax.f32 %v2517_v53, 0.0  ;;  %v2594_v60 = vmax.f32 %v2560_v12, 0.0 }
 0x590   : > { %4790 = vmatprep.subr.bf16.mxu0 %v5253_v10  ;;  %4812 = vmatprep.subr.bf16.mxu1 %v5254_v51 }
 0x591   : > { %v2593_v63 = vmax.f32 %v2519_v55, 0.0  ;;  %v2595_v0 = vmax.f32 %v2562_v56, 0.0  ;;  %v2608_v6 = vpack.c.bf16 %v2592_v59, %v2576_v1  ;;  %v2610_v7 = vpack.c.bf16 %v2594_v60, %v2578_v2 }
 0x593   : > { %v2609_v3 = vpack.c.bf16 %v2593_v63, %v2577_v61  ;;  %v2611_v4 = vpack.c.bf16 %v2595_v0, %v2579_v62  ;;  %4791 = vmatpush3.bf16.msra.mxu0 %v5255_v57  ;;  %4813 = vmatpush3.bf16.msra.mxu1 %v5256_v58 }
 0x595   : > { %3919 = vmatprep.mubr.bf16.mxu0 %v2609_v3  ;;  %3960 = vmatprep.mubr.bf16.mxu1 %v2611_v4 }
 0x596   : > { %3920 = vmatmul.mubr.bf16.vlgmr.msra.gmra.mxu0 %v2608_v6  ;;  %3961 = vmatmul.mubr.bf16.vlgmr.msra.gmra.mxu1 %v2610_v7 }
 0x5f6   : > { %v4660_v8 = vpop.f32.mrf.mxu0  ;;  %v4682_v19 = vpop.f32.mrf.mxu1 }
 0x5f8   : > { %v4661_v21 = vpop.f32.mrf.mxu0  ;;  %v4683_v22 = vpop.f32.mrf.mxu1 }
 0x5f9   : > { %v4662_v35 = vadd.f32 %v4661_v21, %v4660_v8  ;;  %v4684_v44 = vadd.f32 %v4683_v22, %v4682_v19 }
 0x5fa   : > { %v4663_v23 = vpop.f32.mrf.mxu0  ;;  %v4685_v25 = vpop.f32.mrf.mxu1 }
 0x5fb   : > { %v3676_v40 = vadd.f32 %v4662_v35, %v4429_v36 }
 0x5fc   : > { %v4664_v5 = vpop.f32.mrf.mxu0  ;;  %v4686_v26 = vpop.f32.mrf.mxu1 }
 0x5fd   : > { %v4665_v41 = vadd.f32 %v4664_v5, %v4663_v23  ;;  %v3717_v20 = vadd.f32 %v4684_v44, %v3676_v40  ;;  %v4687_v47 = vadd.f32 %v4686_v26, %v4685_v25  ;;  %v4559_v40 = vld [vmem:[%s5707_s10 + $0x8] ss:$0 sm:$0xff] }
 0x5ff   : > { %v3679_v13 = vadd.f32 %v4665_v41, %v4429_v36 }
 0x601   : > { %v3720_v50 = vadd.f32 %v4687_v47, %v3679_v13 }
 0x616   : > { %v4704_v27 = vpop.f32.mrf.mxu0  ;;  %v4726_v28 = vpop.f32.mrf.mxu1 }
 0x618   : > { %v4705_v29 = vpop.f32.mrf.mxu0  ;;  %v4727_v30 = vpop.f32.mrf.mxu1 }
 0x619   : > { %v4706_v45 = vadd.f32 %v4705_v29, %v4704_v27  ;;  %v4728_v17 = vadd.f32 %v4727_v30, %v4726_v28 }
 0x61a   : > { %v4707_v32 = vpop.f32.mrf.mxu0  ;;  %v4729_v33 = vpop.f32.mrf.mxu1 }
 0x61b   : > { %v3758_v48 = vadd.f32 %v4706_v45, %v3717_v20 }
 0x61c   : > { %v4708_v34 = vpop.f32.mrf.mxu0  ;;  %v4730_v37 = vpop.f32.mrf.mxu1 }
 0x61d   : > { %v4709_v15 = vadd.f32 %v4708_v34, %v4707_v32  ;;  %v3799_v51 = vadd.f32 %v4728_v17, %v3758_v48  ;;  %v4731_v53 = vadd.f32 %v4730_v37, %v4729_v33 }
 0x61f   : > { %v3761_v52 = vadd.f32 %v4709_v15, %v3720_v50 }
 0x621   : > { %v3802_v54 = vadd.f32 %v4731_v53, %v3761_v52 }
 0x636   : > { %v4748_v38 = vpop.f32.mrf.mxu0  ;;  %v4770_v39 = vpop.f32.mrf.mxu1 }
 0x638   : > { %v4749_v18 = vpop.f32.mrf.mxu0  ;;  %v4771_v46 = vpop.f32.mrf.mxu1 }
 0x639   : > { %v4750_v9 = vadd.f32 %v4749_v18, %v4748_v38  ;;  %v4772_v55 = vadd.f32 %v4771_v46, %v4770_v39  ;;  %v4558_v38 = vld [vmem:[%s5707_s10 + $0x7] ss:$0 sm:$0xff] }
 0x63a   : > { %v4751_v14 = vpop.f32.mrf.mxu0  ;;  %v4773_v49 = vpop.f32.mrf.mxu1 }
 0x63b   : > { %v3840_v12 = vadd.f32 %v4750_v9, %v3799_v51 }
 0x63c   : > { %v4752_v10 = vpop.f32.mrf.mxu0  ;;  %v4774_v24 = vpop.f32.mrf.mxu1 }
 0x63d   : > { %v4753_v16 = vadd.f32 %v4752_v10, %v4751_v14  ;;  %v3881_v58 = vadd.f32 %v4772_v55, %v3840_v12  ;;  %v4775_v63 = vadd.f32 %v4774_v24, %v4773_v49 }
 0x63f   : > { %v3843_v59 = vadd.f32 %v4753_v16, %v3802_v54 }
 0x641   : > { %v3884_v4 = vadd.f32 %v4775_v63, %v3843_v59 }
 0x656   : > { %v4792_v11 = vpop.f32.mrf.mxu0  ;;  %v4814_v31 = vpop.f32.mrf.mxu1 }
 0x658   : > { %v4793_v56 = vpop.f32.mrf.mxu0  ;;  %v4815_v57 = vpop.f32.mrf.mxu1 }
 0x659   : > { %v4794_v60 = vadd.f32 %v4793_v56, %v4792_v11  ;;  %v4816_v1 = vadd.f32 %v4815_v57, %v4814_v31 }
 0x65a   : > { %v4795_v61 = vpop.f32.mrf.mxu0  ;;  %v4817_v62 = vpop.f32.mrf.mxu1 }
 0x65b   : > { %v3922_v0 = vadd.f32 %v4794_v60, %v3881_v58 }
 0x65c   : > { %v4796_v2 = vpop.f32.mrf.mxu0  ;;  %v4818_v3 = vpop.f32.mrf.mxu1 }
 0x65d   : > { %v3963_v6 = vadd.f32 %v4816_v1, %v3922_v0  ;;  %v4797_v7 = vadd.f32 %v4796_v2, %v4795_v61  ;;  %v4819_v19 = vadd.f32 %v4818_v3, %v4817_v62 }
 0x65f   : > { %v3925_v8 = vadd.f32 %v4797_v7, %v3884_v4  ;;  %v3969_v21 = vadd.f32 %v3963_v6, %v5959_v42 }
 0x661   : > { %v3966_v22 = vadd.f32 %v4819_v19, %v3925_v8  ;;  %3973 = vadd.xlane.f32.xlu0 %v3969_v21 }
 0x663   : > { %v3970_v23 = vadd.f32 %v3966_v22, %v5961_v43 }
 0x665   : > { %3975 = vadd.xlane.f32.xlu1 %v3970_v23 }
 0x6ea   : > { %v3974_v25 = vpop.xlane.xlu0 %3973 }
 0x6eb   : > { %v3977_v5 = vmul.f32 0.0078125, %v3974_v25 }
 0x6ed   : > { %v3979_v26 = vsub.f32 %v3969_v21, %v3977_v5 }
 0x6ee   : > { %v3976_v27 = vpop.xlane.xlu1 %3975 }
 0x6ef   : > { %v3978_v28 = vmul.f32 0.0078125, %v3976_v27  ;;  %v3981_v29 = vmul.f32 %v3979_v26, %v3979_v26 }
 0x6f1   : > { %v3980_v30 = vsub.f32 %v3970_v23, %v3978_v28  ;;  %3983 = vadd.xlane.f32.xlu0 %v3981_v29 }
 0x6f3   : > { %v3982_v32 = vmul.f32 %v3980_v30, %v3980_v30 }
 0x6f5   : > { %3985 = vadd.xlane.f32.xlu1 %v3982_v32 }
 0x77a   : > { %v3984_v33 = vpop.xlane.xlu0 %3983 }
 0x77b   : > { %v3987_v34 = vmul.f32 0.0078125, %v3984_v33 }
 0x77d   : > { %v3989_v42 = vadd.f32 1e-05, %v3987_v34 }
 0x77e   : > { %v3986_v35 = vpop.xlane.xlu1 %3985 }
 0x77f   : > { %5273 = vrsqrt.f32 %v3989_v42  ;;  %v3988_v36 = vmul.f32 0.0078125, %v3986_v35 }
 0x781   : > { %v3990_v43 = vadd.f32 1e-05, %v3988_v36 }
 0x783   : > { %5275 = vrsqrt.f32 %v3990_v43 }
 0x78c   : > { %v5274_v37 = vpop.eup %5273 }
 0x78d   : > { %v3993_v39 = vmul.f32 %v5274_v37, %v3979_v26 }
 0x78f   : > { %v3999_v41 = vmul.f32 %v4558_v38, %v3993_v39 }
 0x790   : > { %v5276_v18 = vpop.eup %5275 }
 0x791   : > { %v4005_v44 = vadd.f32 %v4559_v40, %v3999_v41  ;;  %v3994_v45 = vmul.f32 %v5276_v18, %v3980_v30 }
 0x793   : > { %4007 = vst [vmem:[#allocation2] sm:$0xff] %v4005_v44  ;;  %v4000_v46 = vmul.f32 %v4558_v38, %v3994_v45  ;;  %4012 = sbr.rel (%p4560_p0) target bundleno = 1945 (0x799), region = 114 }
 0x795   : > { %v4006_v20 = vadd.f32 %v4559_v40, %v4000_v46 }
 0x797   : > { %4008 = vst [vmem:[#allocation2 + $0x8] sm:$0xff] %v4006_v20 }
 0x798   : > { %4013 = vst [vmem:[%s5714_s16] sm:$0xff] %v4005_v44  ;;  %4014 = vst [vmem:[%s5714_s16 + $0x8] sm:$0xff] %v4006_v20 }
 0x799 PF: > { %s6391_s20 = sld [smem:[#allocation17_spill]]  ;;  %s4028_s25 = sshll.u32 %s5714_s16, 4  ;;  %s6276_s25 = int_to_ptr.vmem [resolvable:$true] %s4028_s25 }
 0x79a   : > { %s6393_s26 = sld [smem:[#allocation30_spill]]  ;;  %s6394_s19 = sand.u32 1, %s5431_s17  }
 0x79b   : > { %s6280_s24 = scalar_lea.sflag [#allocation7], %s6394_s19  ;;  %s5331_s6 = scalar_lea.vmem %s6276_s25, 256 }
 0x79c   : > { %p5332_p2 = scmp.ne.s32.totalorder %s6276_s25, %s5331_s6  ;;  %s5465_s1 = smov [#allocation10]  }
 0x79d   : > { %s5335_s11 = sshll.u32 %s5465_s1, 4  ;;  %s5336_s11 = int_to_ptr.vmem [resolvable:$false] %s5335_s11 }
 0x79e   : > { %p5333_p5 = pnand %p5332_p2, %p5625_p13  ;;  %s5337_s27 = scalar_lea.vmem %s5336_s11, 512 }
 0x79f   : > { %s4562_s13 = sshll.u32 %s6391_s20, 7  ;;  %p5338_p3 = scmp.lt.s32.totalorder %s6276_s25, %s5336_s11 }
 0x7a0   : > { %s6273_s12 = scalar_lea.hbm %s6393_s26, %s4562_s13  ;;  %p5334_p1 = pneg %p5333_p5 }
 0x7a1   : > { %p5339_p6 = scmp.lt.s32.totalorder %s5337_s27, %s5331_s6 }
 0x7a3   : > { %p5340_p8 = por %p5339_p6, %p5338_p3 }
 0x7a5   : > { %p5341_p9 = pnand %p5340_p8, %p5334_p1 }
 0x7a7   : > { %5344 = shalt.err (!%p5341_p9)
}
 0x7a8   : > { %s5345_s16 = scalar_lea.hbm %s6273_s12, 256  ;;  %s5349_s2 = scalar_lea.hbm %s6393_s26, 512 }
 0x7a9   : > { %p5346_p10 = scmp.ne.s32.totalorder %s6273_s12, %s5345_s16  ;;  %p5350_p12 = scmp.lt.s32.totalorder %s6273_s12, %s6393_s26 }
 0x7aa   : > { %p5351_p0 = scmp.lt.s32.totalorder %s5349_s2, %s5345_s16 }
 0x7ab   : > { %p5347_p11 = pnand %p5346_p10, %p5625_p13 }
 0x7ac   : > { %p5352_p2 = por %p5351_p0, %p5350_p12 }
 0x7ad   : > { %p5348_p7 = pneg %p5347_p11 }
 0x7af   : > { %p5353_p5 = pnand %p5352_p2, %p5348_p7 }
 0x7b1   : > { %5356 = shalt.err (!%p5353_p5)
}
 0x7b2   : > { %s5466_s22 = smov 128   ;;  %s5467_s20 = smov 256  }
 0x7b3   : > { %s5468_s13 = smov 8  }
 0x7b4   : > { %4984 = dma.vmem_to_hbm [thread:$0]  (%p5625_p13), %s6276_s25, 256, %s6273_s12, %s6280_s24, %s5466_s22, %s5467_s20, %s5468_s13  }
 0x7b5 PF: > { %s6395_s10 = sld [smem:[#allocation14_spill]]  ;;  %p4990_p1 = scmp.ge.s32.totalorder %s5455_s23, 2 }
 0x7b7   : > { %p4987_p3 = pnand %p4990_p1, %p5631_p4 }
 0x7b9   : > { %p4988_p6 = pneg %p4987_p3 }
 0x7bb   : > { %s4043_s19 = sand.u32 1, %s6395_s10  }
 0x7bc   : > { %s4044_s6 = scalar_lea.sflag [#allocation7], %s4043_s19 }
 0x7bd   : > { %5410 = dma.done.wait (%p4988_p6), %s4044_s6, 256  }
 0x7be   : > { %5412 = vsyncadd (%p4988_p6), %s4044_s6, 4294967040  ;;  %s29_s23 = sadd.s32 1, %s5455_s23   ;;  %s6397_s1 = sld [smem:[#allocation15_spill]] }
 0x7bf   : > { %p26_p8 = scmp.ge.s32.totalorder %s29_s23, 6   ;;  %s6398_s16 = sld [smem:[#allocation22_spill]] }
 0x7c0   : > { %s6399_s21 = sld [smem:[#allocation16_spill]]  ;;  %s6405_s13 = smov %s5431_s17 }
 0x7c1   : > { %s6400_s18 = sld [smem:[#allocation23_spill]]  ;;  %s6406_s14 = smov %s5423_s15 }
 0x7c2   : > { %s6401_s19 = sld [smem:[#allocation18_spill]] }
 0x7c3   : > { %s6402_s20 = sld [smem:[#allocation19_spill]] }
 0x7c4   : > { %s6403_s12 = sld [smem:[#allocation20_spill]]  ;;  %s6407_s15 = smov %s6397_s1 }
 0x7c5   : > { %s6404_s22 = sld [smem:[#allocation21_spill]] }
 0x7c6   : > { %s6408_s17 = smov %s6399_s21  ;;  %28 = sbr.rel (!%p26_p8) target bundleno = 17 (0x11), region = 190 }
 0x7ca   : > { %s6409_s21 = smov %s6403_s12 }
 0x7cb   :  { %4049 = vsyncpa [#allocation6], 1 }
 0x7cc   :  { %4051 = vsyncpa [#allocation6 + $0x1], 1 }
 0x7cd   :  { %4052 = vsyncpa [#allocation9], 1 }
 0x7ce   :  { %4054 = vsyncpa [#allocation9 + $0x1], 1 }
 0x7cf   :  { %4055 = vsyncpa [#allocation7], 1 }
 0x7d0   :  { %4057 = vsyncpa [#allocation7 + $0x1], 1 }

</bundles_post_ra>
